<compile_context>
chip_gen: v7x
topology: tpu7x:2x2x1
jax: 0.10.0
libtpu: 0.0.40
codegen_flags: <defaults>
</compile_context>

<pallas_src>
import functools
import numpy as np

import jax
import jax.numpy as jnp
from jax import lax
from jax.experimental import pallas as pl
from jax.experimental.pallas import tpu as pltpu


def _round_up(x, m):
    return (x + m - 1) // m * m


# ----------------------------------------------------------------------------
# Pallas kernel: fused matmul + bias + optional ReLU
#   - x may be uint8 (conv1 patches) or bf16; converted in-kernel.
#   - matmul runs in bf16 on the MXU with f32 accumulation.
#   - bias add / ReLU epilogue in f32; output cast to o_ref dtype.
# ----------------------------------------------------------------------------
def _mm_bias_act_kernel(x_ref, w_ref, b_ref, o_ref, *, relu):
    x = x_ref[...]
    if x.dtype == jnp.uint8:
        x = x.astype(jnp.float32)          # exact: 0..255 fits f32/bf16
    x = x.astype(w_ref.dtype)              # bf16 MXU operands
    acc = jnp.dot(x, w_ref[...], preferred_element_type=jnp.float32)
    acc = acc + b_ref[...].astype(jnp.float32)
    if relu:
        acc = jnp.maximum(acc, 0.0)
    o_ref[...] = acc.astype(o_ref.dtype)


def matmul_bias_act(x, w, b, *, relu=False, out_dtype=jnp.float32, tm=256):
    """y = [relu](x @ w + b), M-tiled Pallas TPU kernel.

    x: (M, K) uint8/bf16, w: (K, N) bf16 (VMEM-resident, constant block),
    b: (N,) f32. Grid iterates over M tiles only (K and N fit a single block
    for this model); the M axis is marked "parallel" for megacore sharding.
    """
    M, K = x.shape
    K2, N = w.shape
    assert K == K2, (K, K2)

    tm_eff = min(int(tm), _round_up(M, 32))       # multiple of 32 (u8 packing)
    Mp = _round_up(M, tm_eff)
    if Mp != M:
        x = jnp.pad(x, ((0, Mp - M), (0, 0)))
    grid = (Mp // tm_eff,)

    kernel = functools.partial(_mm_bias_act_kernel, relu=relu)
    bytes_accessed = int(
        Mp * K * x.dtype.itemsize
        + K * N * w.dtype.itemsize
        + N * 4
        + Mp * N * jnp.dtype(out_dtype).itemsize
    )
    out = pl.pallas_call(
        kernel,
        out_shape=jax.ShapeDtypeStruct((Mp, N), out_dtype),
        grid=grid,
        in_specs=[
            pl.BlockSpec((tm_eff, K), lambda i: (i, 0)),   # x: tiled over M
            pl.BlockSpec((K, N), lambda i: (0, 0)),        # w: VMEM-resident
            pl.BlockSpec((1, N), lambda i: (0, 0)),        # b: VMEM-resident
        ],
        out_specs=pl.BlockSpec((tm_eff, N), lambda i: (i, 0)),
        compiler_params=pltpu.CompilerParams(
            dimension_semantics=("parallel",),
            vmem_limit_bytes=32 * 1024 * 1024,
        ),
        cost_estimate=pl.CostEstimate(
            flops=2 * Mp * K * N,
            transcendentals=0,
            bytes_accessed=bytes_accessed,
        ),
    )(x, w, b.reshape(1, N))
    return out[:M] if Mp != M else out


# ----------------------------------------------------------------------------
# Conv layer = im2col (glue, stays uint8/bf16) + fused Pallas matmul/bias/ReLU
# ----------------------------------------------------------------------------
def conv2d_relu(x_nhwc, w_mat, b, ksize, stride, out_ch, *,
                out_dtype=jnp.bfloat16):
    N, H, W, C = x_nhwc.shape
    oh = (H - ksize) // stride + 1
    ow = (W - ksize) // stride + 1

    # im2col: (kh, kw, C)-ordered patches -> (N*oh*ow, k*k*C), in input dtype
    # (uint8 for conv1, bf16 afterwards) so the expanded copy is cheap.
    # TODO(synk): gather patches in-kernel (manual DMA of contiguous row bands
    # per output tile) to eliminate the k^2 im2col expansion in HBM entirely.
    cols = []
    for i in range(ksize):
        for j in range(ksize):
            cols.append(
                x_nhwc[:, i:i + stride * (oh - 1) + 1:stride,
                          j:j + stride * (ow - 1) + 1:stride, :])
    patches = jnp.stack(cols, axis=3)                       # (N, oh, ow, k*k, C)
    patches = patches.reshape(N * oh * ow, ksize * ksize * C)

    y = matmul_bias_act(patches, w_mat, b, relu=True, out_dtype=out_dtype)
    return y.reshape(N, oh, ow, out_ch)


# ----------------------------------------------------------------------------
# Parameters: PyTorch-layout init + one-time inference-layout preparation
# ----------------------------------------------------------------------------
def _conv_out_hw(hw, ksize, stride):
    return (hw - ksize) // stride + 1


def init_params(key, input_shape, n_actions):
    """PyTorch-convention parameters (OIHW conv, (out,in) linear), f32."""
    in_ch, H, W = input_shape
    h = _conv_out_hw(_conv_out_hw(_conv_out_hw(H, 8, 4), 4, 2), 3, 1)
    w = _conv_out_hw(_conv_out_hw(_conv_out_hw(W, 8, 4), 4, 2), 3, 1)
    conv_out_size = 64 * h * w

    def uinit(k, shape, fan_in):
        bound = 1.0 / np.sqrt(fan_in)
        return jax.random.uniform(k, shape, jnp.float32, -bound, bound)

    ks = jax.random.split(key, 14)
    p = {
        "c1w": uinit(ks[0], (32, in_ch, 8, 8), in_ch * 8 * 8),
        "c1b": uinit(ks[1], (32,), in_ch * 8 * 8),
        "c2w": uinit(ks[2], (64, 32, 4, 4), 32 * 4 * 4),
        "c2b": uinit(ks[3], (64,), 32 * 4 * 4),
        "c3w": uinit(ks[4], (64, 64, 3, 3), 64 * 3 * 3),
        "c3b": uinit(ks[5], (64,), 64 * 3 * 3),
        "p1w": uinit(ks[6], (512, conv_out_size), conv_out_size),
        "p1b": uinit(ks[7], (512,), conv_out_size),
        "p2w": uinit(ks[8], (n_actions, 512), 512),
        "p2b": uinit(ks[9], (n_actions,), 512),
        "v1w": uinit(ks[10], (512, conv_out_size), conv_out_size),
        "v1b": uinit(ks[11], (512,), conv_out_size),
        "v2w": uinit(ks[12], (1, 512), 512),
        "v2b": uinit(ks[13], (1,), 512),
    }
    return p, conv_out_size


def prepare_params(p, input_shape):
    """One-time layout plumbing: (K,N) bf16 matmul weights, 1/256 folded into
    conv1, NHWC-flatten row permutation for the hidden weights, fused heads."""
    in_ch, H, W = input_shape
    h1, w1 = _conv_out_hw(H, 8, 4), _conv_out_hw(W, 8, 4)
    h2, w2 = _conv_out_hw(h1, 4, 2), _conv_out_hw(w1, 4, 2)
    h3, w3 = _conv_out_hw(h2, 3, 1), _conv_out_hw(w2, 3, 1)
    conv_out_size = 64 * h3 * w3

    def conv_w(w_oihw):  # (O,I,kh,kw) -> (kh*kw*I, O)
        o, i, kh, kw = w_oihw.shape
        return jnp.transpose(w_oihw, (2, 3, 1, 0)).reshape(kh * kw * i, o)

    def lin_w_nhwc(w_out_in):  # (512, C*H*W torch order) -> (H*W*C nhwc, 512)
        w4 = w_out_in.reshape(-1, 64, h3, w3)
        return jnp.transpose(w4, (2, 3, 1, 0)).reshape(conv_out_size, -1)

    n_actions = p["p2w"].shape[0]
    # fused hidden weights (policy|value)
    hw = jnp.concatenate([lin_w_nhwc(p["p1w"]), lin_w_nhwc(p["v1w"])], axis=1)
    hb = jnp.concatenate([p["p1b"], p["v1b"]])
    # fused output weights: block-diagonal (1024, n_actions+1)
    ow_top = jnp.concatenate(
        [p["p2w"].T, jnp.zeros((512, 1), jnp.float32)], axis=1)
    ow_bot = jnp.concatenate(
        [jnp.zeros((512, n_actions), jnp.float32), p["v2w"].T], axis=1)
    ow = jnp.concatenate([ow_top, ow_bot], axis=0)
    ob = jnp.concatenate([p["p2b"], p["v2b"]])

    return {
        "c1w": (conv_w(p["c1w"]) * (1.0 / 256.0)).astype(jnp.bfloat16),
        "c1b": p["c1b"].astype(jnp.float32),
        "c2w": conv_w(p["c2w"]).astype(jnp.bfloat16),
        "c2b": p["c2b"].astype(jnp.float32),
        "c3w": conv_w(p["c3w"]).astype(jnp.bfloat16),
        "c3b": p["c3b"].astype(jnp.float32),
        "hw": hw.astype(jnp.bfloat16),
        "hb": hb.astype(jnp.float32),
        "ow": ow.astype(jnp.bfloat16),
        "ob": ob.astype(jnp.float32),
    }


# ----------------------------------------------------------------------------
# Forward: equivalent of AtariA2C.forward(x) -> (policy_logits, value)
# ----------------------------------------------------------------------------
@jax.jit
def atari_a2c_forward(x_nchw, ip):
    # Keep frames uint8 through transpose + im2col; /256 is folded into c1w and
    # the uint8->float cast happens inside the first Pallas kernel.
    x = jnp.transpose(x_nchw, (0, 2, 3, 1))                 # NCHW -> NHWC, uint8

    h = conv2d_relu(x, ip["c1w"], ip["c1b"], 8, 4, 32)
    h = conv2d_relu(h, ip["c2w"], ip["c2b"], 4, 2, 64)
    h = conv2d_relu(h, ip["c3w"], ip["c3b"], 3, 1, 64)

    # NHWC flatten (hidden weights were row-permuted at prep time to match).
    conv_out = h.reshape(h.shape[0], -1)

    # fused policy|value hidden layer, then fused block-diagonal output layer
    hidden = matmul_bias_act(conv_out, ip["hw"], ip["hb"], relu=True,
                             out_dtype=jnp.bfloat16)
    out = matmul_bias_act(hidden, ip["ow"], ip["ob"], relu=False,
                          out_dtype=jnp.float32)

    n_actions = ip["ow"].shape[1] - 1
    policy = out[:, :n_actions]
    value = out[:, n_actions:]
    return policy, value


# ----------------------------------------------------------------------------
# Pure-JAX f32 reference (PyTorch semantics, for correctness check)
# ----------------------------------------------------------------------------
def reference_forward(x_nchw, params):
    fx = x_nchw.astype(jnp.float32) / 256.0
    h = fx
    for w, b, s in ((params["c1w"], params["c1b"], 4),
                    (params["c2w"], params["c2b"], 2),
                    (params["c3w"], params["c3b"], 1)):
        h = lax.conv_general_dilated(
            h, w, (s, s), "VALID", dimension_numbers=("NCHW", "OIHW", "NCHW"))
        h = jax.nn.relu(h + b[None, :, None, None])
    flat = h.reshape(h.shape[0], -1)
    policy = (jax.nn.relu(flat @ params["p1w"].T + params["p1b"])
              @ params["p2w"].T + params["p2b"])
    value = (jax.nn.relu(flat @ params["v1w"].T + params["v1b"])
             @ params["v2w"].T + params["v2b"])
    return policy, value


# ----------------------------------------------------------------------------
if __name__ == "__main__":
    # Small shapes consistent with the conv stack (needs >=36 spatial):
    # batch=2, channels=4, spatial=48x48, n_actions=6 (Pong).
    batch, in_ch, H, W = 2, 4, 48, 48
    n_actions = 6

    key = jax.random.PRNGKey(0)
    k_params, k_x = jax.random.split(key)
    params, conv_out_size = init_params(k_params, (in_ch, H, W), n_actions)
    iparams = prepare_params(params, (in_ch, H, W))

    x = jax.random.randint(k_x, (batch, in_ch, H, W), 0, 256,
                           dtype=jnp.int32).astype(jnp.uint8)

    policy, value = atari_a2c_forward(x, iparams)
    policy, value = jax.block_until_ready((policy, value))

    assert policy.shape == (batch, n_actions), policy.shape
    assert value.shape == (batch, 1), value.shape

    # correctness check against pure-JAX f32 reference (bf16 MXU operands
    # => tolerance loosened accordingly, expected precision change).
    ref_policy, ref_value = reference_forward(x, params)
    np.testing.assert_allclose(np.asarray(policy), np.asarray(ref_policy),
                               rtol=5e-2, atol=5e-2)
    np.testing.assert_allclose(np.asarray(value), np.asarray(ref_value),
                               rtol=5e-2, atol=5e-2)

    print("KERNEL_OK")
</pallas_src>

<mosaic_0001>
module attributes {stable_mosaic.version = 11 : i64} {
  func.func @_mm_bias_act_kernel(%arg0: i32, %arg1: memref<256x256xi8, #tpu.memory_space<vmem>>, %arg2: memref<256x32xbf16, #tpu.memory_space<vmem>>, %arg3: memref<1x32xf32, #tpu.memory_space<vmem>>, %arg4: memref<256x32xbf16, #tpu.memory_space<vmem>>) attributes {dimension_semantics = [#tpu.dimension_semantics<parallel>], iteration_bounds = array<i64: 1>, scalar_prefetch = 0 : i64, scratch_operands = 0 : i64, tpu.core_type = #tpu.core_type<tc>, window_params = [{transform_indices = @transform_0, window_bounds = array<i64: 256, 256>}, {pipeline_mode = #tpu.pipeline_mode<synchronous>, transform_indices = @transform_1, window_bounds = array<i64: 256, 32>}, {pipeline_mode = #tpu.pipeline_mode<synchronous>, transform_indices = @transform_2, window_bounds = array<i64: 1, 32>}, {transform_indices = @transform_3, window_bounds = array<i64: 256, 32>}]} {
    %c0 = arith.constant 0 : index
    %c0_0 = arith.constant 0 : index
    %0 = vector.load %arg1[%c0, %c0_0] : memref<256x256xi8, #tpu.memory_space<vmem>>, vector<256x256xi8>
    %1 = arith.uitofp %0 : vector<256x256xi8> to vector<256x256xf32>
    %2 = arith.truncf %1 : vector<256x256xf32> to vector<256x256xbf16>
    %c0_1 = arith.constant 0 : index
    %c0_2 = arith.constant 0 : index
    %3 = vector.load %arg2[%c0_1, %c0_2] : memref<256x32xbf16, #tpu.memory_space<vmem>>, vector<256x32xbf16>
    %cst = arith.constant dense<0.000000e+00> : vector<256x32xf32>
    %4 = tpu.matmul %2, %3, %cst {dimension_numbers = #tpu.dot_dimension_numbers<[1], [0], [0], [1], [0, 0, 1, 1], [], []>} : vector<256x256xbf16>, vector<256x32xbf16>, vector<256x32xf32> -> vector<256x32xf32>
    %c0_3 = arith.constant 0 : index
    %c0_4 = arith.constant 0 : index
    %5 = vector.load %arg3[%c0_3, %c0_4] : memref<1x32xf32, #tpu.memory_space<vmem>>, vector<1x32xf32>
    %6 = vector.broadcast %5 : vector<1x32xf32> to vector<256x32xf32>
    %7 = arith.addf %4, %6 : vector<256x32xf32>
    %cst_5 = arith.constant 0.000000e+00 : f32
    %8 = vector.broadcast %cst_5 : f32 to vector<256x32xf32>
    %9 = arith.maximumf %7, %8 : vector<256x32xf32>
    %10 = arith.truncf %9 : vector<256x32xf32> to vector<256x32xbf16>
    %c0_6 = arith.constant 0 : index
    %c0_7 = arith.constant 0 : index
    %11 = vector.load %arg4[%c0_6, %c0_7] : memref<256x32xbf16, #tpu.memory_space<vmem>>, vector<256x32xbf16>
    tpu.vector_store %arg4[%c0_6, %c0_7], %10 {strides = array<i32>} : memref<256x32xbf16, #tpu.memory_space<vmem>>, vector<256x32xbf16>,
    return
  }
  func.func @transform_0(%arg0: i32) -> (i32, i32) {
    %c0_i32 = arith.constant 0 : i32
    %c0_i32_0 = arith.constant 0 : i32
    return %arg0, %c0_i32 : i32, i32
  }
  func.func @transform_1(%arg0: i32) -> (i32, i32) {
    %c0_i32 = arith.constant 0 : i32
    %c0_i32_0 = arith.constant 0 : i32
    %c0_i32_1 = arith.constant 0 : i32
    return %c0_i32, %c0_i32_0 : i32, i32
  }
  func.func @transform_2(%arg0: i32) -> (i32, i32) {
    %c0_i32 = arith.constant 0 : i32
    %c0_i32_0 = arith.constant 0 : i32
    %c0_i32_1 = arith.constant 0 : i32
    return %c0_i32, %c0_i32_0 : i32, i32
  }
  func.func @transform_3(%arg0: i32) -> (i32, i32) {
    %c0_i32 = arith.constant 0 : i32
    %c0_i32_0 = arith.constant 0 : i32
    return %arg0, %c0_i32 : i32, i32
  }
}

module attributes {stable_mosaic.version = 11 : i64} {
  func.func @_mm_bias_act_kernel(%arg0: i32, %arg1: memref<32x512xbf16, #tpu.memory_space<vmem>>, %arg2: memref<512x64xbf16, #tpu.memory_space<vmem>>, %arg3: memref<1x64xf32, #tpu.memory_space<vmem>>, %arg4: memref<32x64xbf16, #tpu.memory_space<vmem>>) attributes {dimension_semantics = [#tpu.dimension_semantics<parallel>], iteration_bounds = array<i64: 1>, scalar_prefetch = 0 : i64, scratch_operands = 0 : i64, tpu.core_type = #tpu.core_type<tc>, window_params = [{transform_indices = @transform_0, window_bounds = array<i64: 32, 512>}, {pipeline_mode = #tpu.pipeline_mode<synchronous>, transform_indices = @transform_1, window_bounds = array<i64: 512, 64>}, {pipeline_mode = #tpu.pipeline_mode<synchronous>, transform_indices = @transform_2, window_bounds = array<i64: 1, 64>}, {transform_indices = @transform_3, window_bounds = array<i64: 32, 64>}]} {
    %c0 = arith.constant 0 : index
    %c0_0 = arith.constant 0 : index
    %0 = vector.load %arg1[%c0, %c0_0] : memref<32x512xbf16, #tpu.memory_space<vmem>>, vector<32x512xbf16>
    %c0_1 = arith.constant 0 : index
    %c0_2 = arith.constant 0 : index
    %1 = vector.load %arg2[%c0_1, %c0_2] : memref<512x64xbf16, #tpu.memory_space<vmem>>, vector<512x64xbf16>
    %cst = arith.constant dense<0.000000e+00> : vector<32x64xf32>
    %2 = tpu.matmul %0, %1, %cst {dimension_numbers = #tpu.dot_dimension_numbers<[1], [0], [0], [1], [0, 0, 1, 1], [], []>} : vector<32x512xbf16>, vector<512x64xbf16>, vector<32x64xf32> -> vector<32x64xf32>
    %c0_3 = arith.constant 0 : index
    %c0_4 = arith.constant 0 : index
    %3 = vector.load %arg3[%c0_3, %c0_4] : memref<1x64xf32, #tpu.memory_space<vmem>>, vector<1x64xf32>
    %4 = vector.broadcast %3 : vector<1x64xf32> to vector<32x64xf32>
    %5 = arith.addf %2, %4 : vector<32x64xf32>
    %cst_5 = arith.constant 0.000000e+00 : f32
    %6 = vector.broadcast %cst_5 : f32 to vector<32x64xf32>
    %7 = arith.maximumf %5, %6 : vector<32x64xf32>
    %8 = arith.truncf %7 : vector<32x64xf32> to vector<32x64xbf16>
    %c0_6 = arith.constant 0 : index
    %c0_7 = arith.constant 0 : index
    %9 = vector.load %arg4[%c0_6, %c0_7] : memref<32x64xbf16, #tpu.memory_space<vmem>>, vector<32x64xbf16>
    tpu.vector_store %arg4[%c0_6, %c0_7], %8 {strides = array<i32>} : memref<32x64xbf16, #tpu.memory_space<vmem>>, vector<32x64xbf16>,
    return
  }
  func.func @transform_0(%arg0: i32) -> (i32, i32) {
    %c0_i32 = arith.constant 0 : i32
    %c0_i32_0 = arith.constant 0 : i32
    return %arg0, %c0_i32 : i32, i32
  }
  func.func @transform_1(%arg0: i32) -> (i32, i32) {
    %c0_i32 = arith.constant 0 : i32
    %c0_i32_0 = arith.constant 0 : i32
    %c0_i32_1 = arith.constant 0 : i32
    return %c0_i32, %c0_i32_0 : i32, i32
  }
  func.func @transform_2(%arg0: i32) -> (i32, i32) {
    %c0_i32 = arith.constant 0 : i32
    %c0_i32_0 = arith.constant 0 : i32
    %c0_i32_1 = arith.constant 0 : i32
    return %c0_i32, %c0_i32_0 : i32, i32
  }
  func.func @transform_3(%arg0: i32) -> (i32, i32) {
    %c0_i32 = arith.constant 0 : i32
    %c0_i32_0 = arith.constant 0 : i32
    return %arg0, %c0_i32 : i32, i32
  }
}

module attributes {stable_mosaic.version = 11 : i64} {
  func.func @_mm_bias_act_kernel(%arg0: i32, %arg1: memref<32x256xbf16, #tpu.memory_space<vmem>>, %arg2: memref<256x1024xbf16, #tpu.memory_space<vmem>>, %arg3: memref<1x1024xf32, #tpu.memory_space<vmem>>, %arg4: memref<32x1024xbf16, #tpu.memory_space<vmem>>) attributes {dimension_semantics = [#tpu.dimension_semantics<parallel>], iteration_bounds = array<i64: 1>, scalar_prefetch = 0 : i64, scratch_operands = 0 : i64, tpu.core_type = #tpu.core_type<tc>, window_params = [{transform_indices = @transform_0, window_bounds = array<i64: 32, 256>}, {pipeline_mode = #tpu.pipeline_mode<synchronous>, transform_indices = @transform_1, window_bounds = array<i64: 256, 1024>}, {pipeline_mode = #tpu.pipeline_mode<synchronous>, transform_indices = @transform_2, window_bounds = array<i64: 1, 1024>}, {transform_indices = @transform_3, window_bounds = array<i64: 32, 1024>}]} {
    %c0 = arith.constant 0 : index
    %c0_0 = arith.constant 0 : index
    %0 = vector.load %arg1[%c0, %c0_0] : memref<32x256xbf16, #tpu.memory_space<vmem>>, vector<32x256xbf16>
    %c0_1 = arith.constant 0 : index
    %c0_2 = arith.constant 0 : index
    %1 = vector.load %arg2[%c0_1, %c0_2] : memref<256x1024xbf16, #tpu.memory_space<vmem>>, vector<256x1024xbf16>
    %cst = arith.constant dense<0.000000e+00> : vector<32x1024xf32>
    %2 = tpu.matmul %0, %1, %cst {dimension_numbers = #tpu.dot_dimension_numbers<[1], [0], [0], [1], [0, 0, 1, 1], [], []>} : vector<32x256xbf16>, vector<256x1024xbf16>, vector<32x1024xf32> -> vector<32x1024xf32>
    %c0_3 = arith.constant 0 : index
    %c0_4 = arith.constant 0 : index
    %3 = vector.load %arg3[%c0_3, %c0_4] : memref<1x1024xf32, #tpu.memory_space<vmem>>, vector<1x1024xf32>
    %4 = vector.broadcast %3 : vector<1x1024xf32> to vector<32x1024xf32>
    %5 = arith.addf %2, %4 : vector<32x1024xf32>
    %cst_5 = arith.constant 0.000000e+00 : f32
    %6 = vector.broadcast %cst_5 : f32 to vector<32x1024xf32>
    %7 = arith.maximumf %5, %6 : vector<32x1024xf32>
    %8 = arith.truncf %7 : vector<32x1024xf32> to vector<32x1024xbf16>
    %c0_6 = arith.constant 0 : index
    %c0_7 = arith.constant 0 : index
    %9 = vector.load %arg4[%c0_6, %c0_7] : memref<32x1024xbf16, #tpu.memory_space<vmem>>, vector<32x1024xbf16>
    tpu.vector_store %arg4[%c0_6, %c0_7], %8 {strides = array<i32>} : memref<32x1024xbf16, #tpu.memory_space<vmem>>, vector<32x1024xbf16>,
    return
  }
  func.func @transform_0(%arg0: i32) -> (i32, i32) {
    %c0_i32 = arith.constant 0 : i32
    %c0_i32_0 = arith.constant 0 : i32
    return %arg0, %c0_i32 : i32, i32
  }
  func.func @transform_1(%arg0: i32) -> (i32, i32) {
    %c0_i32 = arith.constant 0 : i32
    %c0_i32_0 = arith.constant 0 : i32
    %c0_i32_1 = arith.constant 0 : i32
    return %c0_i32, %c0_i32_0 : i32, i32
  }
  func.func @transform_2(%arg0: i32) -> (i32, i32) {
    %c0_i32 = arith.constant 0 : i32
    %c0_i32_0 = arith.constant 0 : i32
    %c0_i32_1 = arith.constant 0 : i32
    return %c0_i32, %c0_i32_0 : i32, i32
  }
  func.func @transform_3(%arg0: i32) -> (i32, i32) {
    %c0_i32 = arith.constant 0 : i32
    %c0_i32_0 = arith.constant 0 : i32
    return %arg0, %c0_i32 : i32, i32
  }
}

module attributes {stable_mosaic.version = 11 : i64} {
  func.func @_mm_bias_act_kernel(%arg0: i32, %arg1: memref<32x576xbf16, #tpu.memory_space<vmem>>, %arg2: memref<576x64xbf16, #tpu.memory_space<vmem>>, %arg3: memref<1x64xf32, #tpu.memory_space<vmem>>, %arg4: memref<32x64xbf16, #tpu.memory_space<vmem>>) attributes {dimension_semantics = [#tpu.dimension_semantics<parallel>], iteration_bounds = array<i64: 1>, scalar_prefetch = 0 : i64, scratch_operands = 0 : i64, tpu.core_type = #tpu.core_type<tc>, window_params = [{transform_indices = @transform_0, window_bounds = array<i64: 32, 576>}, {pipeline_mode = #tpu.pipeline_mode<synchronous>, transform_indices = @transform_1, window_bounds = array<i64: 576, 64>}, {pipeline_mode = #tpu.pipeline_mode<synchronous>, transform_indices = @transform_2, window_bounds = array<i64: 1, 64>}, {transform_indices = @transform_3, window_bounds = array<i64: 32, 64>}]} {
    %c0 = arith.constant 0 : index
    %c0_0 = arith.constant 0 : index
    %0 = vector.load %arg1[%c0, %c0_0] : memref<32x576xbf16, #tpu.memory_space<vmem>>, vector<32x576xbf16>
    %c0_1 = arith.constant 0 : index
    %c0_2 = arith.constant 0 : index
    %1 = vector.load %arg2[%c0_1, %c0_2] : memref<576x64xbf16, #tpu.memory_space<vmem>>, vector<576x64xbf16>
    %cst = arith.constant dense<0.000000e+00> : vector<32x64xf32>
    %2 = tpu.matmul %0, %1, %cst {dimension_numbers = #tpu.dot_dimension_numbers<[1], [0], [0], [1], [0, 0, 1, 1], [], []>} : vector<32x576xbf16>, vector<576x64xbf16>, vector<32x64xf32> -> vector<32x64xf32>
    %c0_3 = arith.constant 0 : index
    %c0_4 = arith.constant 0 : index
    %3 = vector.load %arg3[%c0_3, %c0_4] : memref<1x64xf32, #tpu.memory_space<vmem>>, vector<1x64xf32>
    %4 = vector.broadcast %3 : vector<1x64xf32> to vector<32x64xf32>
    %5 = arith.addf %2, %4 : vector<32x64xf32>
    %cst_5 = arith.constant 0.000000e+00 : f32
    %6 = vector.broadcast %cst_5 : f32 to vector<32x64xf32>
    %7 = arith.maximumf %5, %6 : vector<32x64xf32>
    %8 = arith.truncf %7 : vector<32x64xf32> to vector<32x64xbf16>
    %c0_6 = arith.constant 0 : index
    %c0_7 = arith.constant 0 : index
    %9 = vector.load %arg4[%c0_6, %c0_7] : memref<32x64xbf16, #tpu.memory_space<vmem>>, vector<32x64xbf16>
    tpu.vector_store %arg4[%c0_6, %c0_7], %8 {strides = array<i32>} : memref<32x64xbf16, #tpu.memory_space<vmem>>, vector<32x64xbf16>,
    return
  }
  func.func @transform_0(%arg0: i32) -> (i32, i32) {
    %c0_i32 = arith.constant 0 : i32
    %c0_i32_0 = arith.constant 0 : i32
    return %arg0, %c0_i32 : i32, i32
  }
  func.func @transform_1(%arg0: i32) -> (i32, i32) {
    %c0_i32 = arith.constant 0 : i32
    %c0_i32_0 = arith.constant 0 : i32
    %c0_i32_1 = arith.constant 0 : i32
    return %c0_i32, %c0_i32_0 : i32, i32
  }
  func.func @transform_2(%arg0: i32) -> (i32, i32) {
    %c0_i32 = arith.constant 0 : i32
    %c0_i32_0 = arith.constant 0 : i32
    %c0_i32_1 = arith.constant 0 : i32
    return %c0_i32, %c0_i32_0 : i32, i32
  }
  func.func @transform_3(%arg0: i32) -> (i32, i32) {
    %c0_i32 = arith.constant 0 : i32
    %c0_i32_0 = arith.constant 0 : i32
    return %arg0, %c0_i32 : i32, i32
  }
}

module attributes {stable_mosaic.version = 11 : i64} {
  func.func @_mm_bias_act_kernel(%arg0: i32, %arg1: memref<32x1024xbf16, #tpu.memory_space<vmem>>, %arg2: memref<1024x7xbf16, #tpu.memory_space<vmem>>, %arg3: memref<1x7xf32, #tpu.memory_space<vmem>>, %arg4: memref<32x7xf32, #tpu.memory_space<vmem>>) attributes {dimension_semantics = [#tpu.dimension_semantics<parallel>], iteration_bounds = array<i64: 1>, scalar_prefetch = 0 : i64, scratch_operands = 0 : i64, tpu.core_type = #tpu.core_type<tc>, window_params = [{transform_indices = @transform_0, window_bounds = array<i64: 32, 1024>}, {pipeline_mode = #tpu.pipeline_mode<synchronous>, transform_indices = @transform_1, window_bounds = array<i64: 1024, 7>}, {pipeline_mode = #tpu.pipeline_mode<synchronous>, transform_indices = @transform_2, window_bounds = array<i64: 1, 7>}, {transform_indices = @transform_3, window_bounds = array<i64: 32, 7>}]} {
    %c0 = arith.constant 0 : index
    %c0_0 = arith.constant 0 : index
    %0 = vector.load %arg1[%c0, %c0_0] : memref<32x1024xbf16, #tpu.memory_space<vmem>>, vector<32x1024xbf16>
    %c0_1 = arith.constant 0 : index
    %c0_2 = arith.constant 0 : index
    %1 = vector.load %arg2[%c0_1, %c0_2] : memref<1024x7xbf16, #tpu.memory_space<vmem>>, vector<1024x7xbf16>
    %cst = arith.constant dense<0.000000e+00> : vector<32x7xf32>
    %2 = tpu.matmul %0, %1, %cst {dimension_numbers = #tpu.dot_dimension_numbers<[1], [0], [0], [1], [0, 0, 1, 1], [], []>} : vector<32x1024xbf16>, vector<1024x7xbf16>, vector<32x7xf32> -> vector<32x7xf32>
    %c0_3 = arith.constant 0 : index
    %c0_4 = arith.constant 0 : index
    %3 = vector.load %arg3[%c0_3, %c0_4] : memref<1x7xf32, #tpu.memory_space<vmem>>, vector<1x7xf32>
    %4 = vector.broadcast %3 : vector<1x7xf32> to vector<32x7xf32>
    %5 = arith.addf %2, %4 : vector<32x7xf32>
    %c0_5 = arith.constant 0 : index
    %c0_6 = arith.constant 0 : index
    %6 = vector.load %arg4[%c0_5, %c0_6] : memref<32x7xf32, #tpu.memory_space<vmem>>, vector<32x7xf32>
    tpu.vector_store %arg4[%c0_5, %c0_6], %5 {strides = array<i32>} : memref<32x7xf32, #tpu.memory_space<vmem>>, vector<32x7xf32>,
    return
  }
  func.func @transform_0(%arg0: i32) -> (i32, i32) {
    %c0_i32 = arith.constant 0 : i32
    %c0_i32_0 = arith.constant 0 : i32
    return %arg0, %c0_i32 : i32, i32
  }
  func.func @transform_1(%arg0: i32) -> (i32, i32) {
    %c0_i32 = arith.constant 0 : i32
    %c0_i32_0 = arith.constant 0 : i32
    %c0_i32_1 = arith.constant 0 : i32
    return %c0_i32, %c0_i32_0 : i32, i32
  }
  func.func @transform_2(%arg0: i32) -> (i32, i32) {
    %c0_i32 = arith.constant 0 : i32
    %c0_i32_0 = arith.constant 0 : i32
    %c0_i32_1 = arith.constant 0 : i32
    return %c0_i32, %c0_i32_0 : i32, i32
  }
  func.func @transform_3(%arg0: i32) -> (i32, i32) {
    %c0_i32 = arith.constant 0 : i32
    %c0_i32_0 = arith.constant 0 : i32
    return %arg0, %c0_i32 : i32, i32
  }
}

</mosaic_0001>

<bundles_post_ra>
// kernel: atari_a2c_forward.5
= control target key start
LH: loop header
LB: loop body
LE: loop exit
PB: predicated region body
PF: predicated region fallthrough
CT: control target
= control target key end

     0   :  { %vm519_vm0 = vcmask 257024   ;;  %s1062_s1 = inlined_call_operand.vmem [shape: bf16[256,32], index: 1, kind: input, shape index: {}]   ;;  %s1063_s0 = inlined_call_operand.vmem [shape: u8[256,256], index: 0, kind: input, shape index: {}]   ;;  %s1064_s2 = inlined_call_operand.vmem [shape: f32[1,32], index: 2, kind: input, shape index: {}]   ;;  %s1065_s3 = inlined_call_operand.vmem [shape: bf16[256,32], index: 3, kind: output, shape index: {}]  }
   0x1   :  { %v765_v0 = vld [vmem:[%s1062_s1 + $0x40] sm:$0xff]   ;;  %v767_v2 = vld [vmem:[%s1062_s1 + $0x48] sm:$0xff]   ;;  %v769_v4 = vld [vmem:[%s1062_s1 + $0x50] sm:$0xff]  }
   0x2   :  { %v766_v1 = vld [vmem:[%s1062_s1] sm:$0xff]   ;;  %637 = vmatprep.subr.bf16.mxu0 %v765_v0  ;;  %749 = vmatprep.subr.bf16.mxu1 %v765_v0  ;;  %v768_v3 = vld [vmem:[%s1062_s1 + $0x8] sm:$0xff]   ;;  %v770_v5 = vld [vmem:[%s1062_s1 + $0x10] sm:$0xff]  }
   0x3   :  { %638 = vmatpush3.bf16.msra.mxu0 %v766_v1  ;;  %757 = vmatpush3.bf16.msra.mxu1 %v766_v1  ;;  %v771_v6 = vld [vmem:[%s1062_s1 + $0x58] sm:$0xff]   ;;  %v773_v8 = vld [vmem:[%s1062_s1 + $0x60] sm:$0xff]   ;;  %v775_v10 = vld [vmem:[%s1062_s1 + $0x68] sm:$0xff]  }
   0x4   :  { %639 = vmatprep.subr.bf16.mxu0 %v767_v2  ;;  %750 = vmatprep.subr.bf16.mxu1 %v767_v2  ;;  %v772_v7 = vld [vmem:[%s1062_s1 + $0x18] sm:$0xff]   ;;  %v774_v9 = vld [vmem:[%s1062_s1 + $0x20] sm:$0xff]   ;;  %v16_v11 = vld [vmem:[%s1063_s0 + $0x8] sm:$0xff] }
   0x5   :  { %v24_v12 = vld [vmem:[%s1063_s0 + $0x48] sm:$0xff]  ;;  %v32_v13 = vunpack.c.l.u8.bf16 %v16_v11  ;;  %v777_v16 = vld [vmem:[%s1062_s1 + $0x70] sm:$0xff]   ;;  %v779_v18 = vld [vmem:[%s1062_s1 + $0x78] sm:$0xff]   ;;  %v34_v24 = vunpack.c.h.u8.bf16 %v16_v11 }
   0x6   :  { %v48_v14 = vunpack.c.l.u8.bf16 %v24_v12  ;;  %v776_v15 = vld [vmem:[%s1062_s1 + $0x28] sm:$0xff]   ;;  %v778_v17 = vld [vmem:[%s1062_s1 + $0x30] sm:$0xff]   ;;  %v780_v19 = vld [vmem:[%s1062_s1 + $0x38] sm:$0xff]   ;;  %v50_v25 = vunpack.c.h.u8.bf16 %v24_v12 }
   0x7   :  { %640 = vmatpush3.bf16.msra.mxu0 %v768_v3  ;;  %758 = vmatpush3.bf16.msra.mxu1 %v768_v3  ;;  %v15_v20 = vld [vmem:[%s1063_s0] sm:$0xff]  ;;  %v18_v26 = vld [vmem:[%s1063_s0 + $0x18] sm:$0xff]  ;;  %v17_v32 = vld [vmem:[%s1063_s0 + $0x10] sm:$0xff] }
   0x8   :  { %641 = vmatprep.subr.bf16.mxu0 %v769_v4  ;;  %751 = vmatprep.subr.bf16.mxu1 %v769_v4  ;;  %v23_v21 = vld [vmem:[%s1063_s0 + $0x40] sm:$0xff]  ;;  %v31_v22 = vunpack.c.l.u8.bf16 %v15_v20  ;;  %v26_v27 = vld [vmem:[%s1063_s0 + $0x58] sm:$0xff]  ;;  %v33_v28 = vunpack.c.h.u8.bf16 %v15_v20  ;;  %v36_v30 = vunpack.c.l.u8.bf16 %v18_v26  ;;  %v25_v33 = vld [vmem:[%s1063_s0 + $0x50] sm:$0xff]  ;;  %v35_v34 = vunpack.c.l.u8.bf16 %v17_v32 }
   0x9   :  { %230 = vmatprep.mubr.bf16.mxu0 %v32_v13  ;;  %294 = vmatprep.mubr.bf16.mxu1 %v48_v14  ;;  %v47_v23 = vunpack.c.l.u8.bf16 %v23_v21  ;;  %v49_v29 = vunpack.c.h.u8.bf16 %v23_v21  ;;  %v52_v31 = vunpack.c.l.u8.bf16 %v26_v27  ;;  %v51_v35 = vunpack.c.l.u8.bf16 %v25_v33  ;;  %v20_v38 = vld [vmem:[%s1063_s0 + $0x28] sm:$0xff]  ;;  %v19_v44 = vld [vmem:[%s1063_s0 + $0x20] sm:$0xff]  ;;  %v22_v50 = vld [vmem:[%s1063_s0 + $0x38] sm:$0xff] }
   0xa   :  { %v38_v36 = vunpack.c.h.u8.bf16 %v18_v26  ;;  %v54_v37 = vunpack.c.h.u8.bf16 %v26_v27  ;;  %v28_v39 = vld [vmem:[%s1063_s0 + $0x68] sm:$0xff]  ;;  %v37_v40 = vunpack.c.h.u8.bf16 %v17_v32  ;;  %v53_v41 = vunpack.c.h.u8.bf16 %v25_v33  ;;  %v27_v45 = vld [vmem:[%s1063_s0 + $0x60] sm:$0xff]  ;;  %v30_v51 = vld [vmem:[%s1063_s0 + $0x78] sm:$0xff] }
   0xb   :  { %642 = vmatpush3.bf16.msra.mxu0 %v770_v5  ;;  %759 = vmatpush3.bf16.msra.mxu1 %v770_v5  ;;  %v40_v42 = vunpack.c.l.u8.bf16 %v20_v38  ;;  %v56_v43 = vunpack.c.l.u8.bf16 %v28_v39  ;;  %v39_v46 = vunpack.c.l.u8.bf16 %v19_v44  ;;  %v55_v47 = vunpack.c.l.u8.bf16 %v27_v45  ;;  %v21_v56 = vld [vmem:[%s1063_s0 + $0x30] sm:$0xff]  ;;  %v900_v2 = vld [vmem:[%s1064_s2] ss:$0 sm:$0xff] }
   0xc   :  { %643 = vmatprep.subr.bf16.mxu0 %v771_v6  ;;  %752 = vmatprep.subr.bf16.mxu1 %v771_v6  ;;  %v42_v48 = vunpack.c.h.u8.bf16 %v20_v38  ;;  %v58_v49 = vunpack.c.h.u8.bf16 %v28_v39  ;;  %v41_v52 = vunpack.c.h.u8.bf16 %v19_v44  ;;  %v57_v53 = vunpack.c.h.u8.bf16 %v27_v45  ;;  %v29_v57 = vld [vmem:[%s1063_s0 + $0x70] sm:$0xff] }
   0xd   :  { %v44_v54 = vunpack.c.l.u8.bf16 %v22_v50  ;;  %v60_v55 = vunpack.c.l.u8.bf16 %v30_v51  ;;  %v43_v58 = vunpack.c.l.u8.bf16 %v21_v56  ;;  %v59_v59 = vunpack.c.l.u8.bf16 %v29_v57 }
   0xe   :  { %v46_v60 = vunpack.c.h.u8.bf16 %v22_v50  ;;  %v62_v61 = vunpack.c.h.u8.bf16 %v30_v51  ;;  %v45_v62 = vunpack.c.h.u8.bf16 %v21_v56  ;;  %v61_v63 = vunpack.c.h.u8.bf16 %v29_v57 }
   0xf   :  { %644 = vmatpush3.bf16.msra.mxu0 %v772_v7  ;;  %760 = vmatpush3.bf16.msra.mxu1 %v772_v7 }
  0x10   :  { %645 = vmatprep.subr.bf16.mxu0 %v773_v8  ;;  %753 = vmatprep.subr.bf16.mxu1 %v773_v8 }
  0x13   :  { %646 = vmatpush3.bf16.msra.mxu0 %v774_v9  ;;  %761 = vmatpush3.bf16.msra.mxu1 %v774_v9 }
  0x14   :  { %647 = vmatprep.subr.bf16.mxu0 %v775_v10  ;;  %754 = vmatprep.subr.bf16.mxu1 %v775_v10 }
  0x17   :  { %648 = vmatpush3.bf16.msra.mxu0 %v776_v15  ;;  %762 = vmatpush3.bf16.msra.mxu1 %v776_v15 }
  0x18   :  { %649 = vmatprep.subr.bf16.mxu0 %v777_v16  ;;  %755 = vmatprep.subr.bf16.mxu1 %v777_v16 }
  0x1b   :  { %650 = vmatpush3.bf16.msra.mxu0 %v778_v17  ;;  %763 = vmatpush3.bf16.msra.mxu1 %v778_v17 }
  0x1c   :  { %651 = vmatprep.subr.bf16.mxu0 %v779_v18  ;;  %756 = vmatprep.subr.bf16.mxu1 %v779_v18 }
  0x1f   :  { %652 = vmatpush3.bf16.msra.mxu0 %v780_v19  ;;  %764 = vmatpush3.bf16.msra.mxu1 %v780_v19 }
  0x22   :  { %231 = vmatmul.mubr.bf16.vlgmr.msra.gmra.mrb[0].mxu0 %v31_v22  ;;  %295 = vmatmul.mubr.bf16.vlgmr.msra.gmra.mrb[0].mxu1 %v47_v23 }
  0x23   :  { %238 = vmatprep.mubr.bf16.mxu0 %v34_v24  ;;  %302 = vmatprep.mubr.bf16.mxu1 %v50_v25 }
  0x2a   :  { %239 = vmatmul.mubr.bf16.gmra.mrb[4].mxu0 %v33_v28  ;;  %303 = vmatmul.mubr.bf16.gmra.mrb[4].mxu1 %v49_v29 }
  0x2b   :  { %246 = vmatprep.mubr.bf16.mxu0 %v36_v30  ;;  %310 = vmatprep.mubr.bf16.mxu1 %v52_v31 }
  0x32   :  { %247 = vmatmul.mubr.bf16.gmra.mrb[8].mxu0 %v35_v34  ;;  %311 = vmatmul.mubr.bf16.gmra.mrb[8].mxu1 %v51_v35 }
  0x33   :  { %254 = vmatprep.mubr.bf16.mxu0 %v38_v36  ;;  %318 = vmatprep.mubr.bf16.mxu1 %v54_v37 }
  0x3a   :  { %255 = vmatmul.mubr.bf16.gmra.mrb[12].mxu0 %v37_v40  ;;  %319 = vmatmul.mubr.bf16.gmra.mrb[12].mxu1 %v53_v41 }
  0x3b   :  { %262 = vmatprep.mubr.bf16.mxu0 %v40_v42  ;;  %326 = vmatprep.mubr.bf16.mxu1 %v56_v43 }
  0x42   :  { %263 = vmatmul.mubr.bf16.gmra.mrb[16].mxu0 %v39_v46  ;;  %327 = vmatmul.mubr.bf16.gmra.mrb[16].mxu1 %v55_v47 }
  0x43   :  { %270 = vmatprep.mubr.bf16.mxu0 %v42_v48  ;;  %334 = vmatprep.mubr.bf16.mxu1 %v58_v49 }
  0x4a   :  { %271 = vmatmul.mubr.bf16.gmra.mrb[20].mxu0 %v41_v52  ;;  %335 = vmatmul.mubr.bf16.gmra.mrb[20].mxu1 %v57_v53 }
  0x4b   :  { %278 = vmatprep.mubr.bf16.mxu0 %v44_v54  ;;  %342 = vmatprep.mubr.bf16.mxu1 %v60_v55 }
  0x52   :  { %279 = vmatmul.mubr.bf16.gmra.mrb[24].mxu0 %v43_v58  ;;  %343 = vmatmul.mubr.bf16.gmra.mrb[24].mxu1 %v59_v59 }
  0x53   :  { %286 = vmatprep.mubr.bf16.mxu0 %v46_v60  ;;  %350 = vmatprep.mubr.bf16.mxu1 %v62_v61 }
  0x5a   :  { %287 = vmatmul.mubr.bf16.gmra.mrb[28].mxu0 %v45_v62  ;;  %351 = vmatmul.mubr.bf16.gmra.mrb[28].mxu1 %v61_v63 }
  0xf5   :  { %v653_v0 = vpop.f32.mrb[0].mxu0  ;;  %v701_v1 = vpop.f32.mrb[0].mxu1 }
  0xf6   :  { %v654_v3 = vpop.f32.mrb[1].mxu0  ;;  %v702_v4 = vpop.f32.mrb[1].mxu1 }
  0xf7   :  { %v655_v5 = vadd.f32 %v654_v3, %v653_v0  ;;  %v703_v6 = vadd.f32 %v702_v4, %v701_v1  ;;  %v656_v7 = vpop.f32.mrb[2].mxu0  ;;  %v704_v8 = vpop.f32.mrb[2].mxu1 }
  0xf8   :  { %v657_v9 = vpop.f32.mrb[3].mxu0  ;;  %v705_v10 = vpop.f32.mrb[3].mxu1 }
  0xf9   :  { %v233_v11 = vadd.f32 %v655_v5, %v900_v2  ;;  %v297_v12 = vadd.f32 %v703_v6, %v900_v2  ;;  %v658_v13 = vadd.f32 %v657_v9, %v656_v7  ;;  %v706_v14 = vadd.f32 %v705_v10, %v704_v8 }
  0xfb   :  { %v359_v15 = vmax.f32 %v233_v11, 0.0  ;;  %v375_v16 = vmax.f32 %v297_v12, 0.0  ;;  %v236_v17 = vadd.f32 %v658_v13, %v900_v2  ;;  %v300_v18 = vadd.f32 %v706_v14, %v900_v2 }
  0xfd   :  { %v605_v19 = vpack.c.bf16 %v359_v15, %v359_v15  ;;  %v621_v20 = vpack.c.bf16 %v375_v16, %v375_v16  ;;  %v360_v21 = vmax.f32 %v236_v17, 0.0  ;;  %v376_v22 = vmax.f32 %v300_v18, 0.0  ;;  %v659_v23 = vpop.f32.mrb[4].mxu0  ;;  %v707_v24 = vpop.f32.mrb[4].mxu1 }
  0xfe   :  { %v660_v25 = vpop.f32.mrb[5].mxu0  ;;  %v708_v26 = vpop.f32.mrb[5].mxu1 }
  0xff   :  { %520 = vst.msk [vmem:[%s1065_s3] sm:$0xf] %vm519_vm0, %v605_v19  ;;  %536 = vst.msk [vmem:[%s1065_s3 + $0x40] sm:$0xf] %vm519_vm0, %v621_v20  ;;  %v606_v27 = vpack.c.bf16 %v360_v21, %v360_v21  ;;  %v622_v28 = vpack.c.bf16 %v376_v22, %v376_v22  ;;  %v661_v29 = vadd.f32 %v660_v25, %v659_v23  ;;  %v662_v31 = vpop.f32.mrb[6].mxu0  ;;  %v710_v32 = vpop.f32.mrb[6].mxu1 }
 0x100   :  { %v709_v30 = vadd.f32 %v708_v26, %v707_v24  ;;  %v663_v33 = vpop.f32.mrb[7].mxu0  ;;  %v711_v34 = vpop.f32.mrb[7].mxu1 }
 0x101   :  { %521 = vst.msk [vmem:[%s1065_s3 + $0x4] sm:$0xf] %vm519_vm0, %v606_v27  ;;  %537 = vst.msk [vmem:[%s1065_s3 + $0x44] sm:$0xf] %vm519_vm0, %v622_v28  ;;  %v241_v35 = vadd.f32 %v661_v29, %v900_v2  ;;  %v664_v37 = vadd.f32 %v663_v33, %v662_v31  ;;  %v712_v38 = vadd.f32 %v711_v34, %v710_v32 }
 0x102   :  { %v305_v36 = vadd.f32 %v709_v30, %v900_v2 }
 0x103   :  { %v361_v39 = vmax.f32 %v241_v35, 0.0  ;;  %v244_v41 = vadd.f32 %v664_v37, %v900_v2  ;;  %v308_v42 = vadd.f32 %v712_v38, %v900_v2 }
 0x104   :  { %v377_v40 = vmax.f32 %v305_v36, 0.0 }
 0x105   :  { %v607_v43 = vpack.c.bf16 %v361_v39, %v361_v39  ;;  %v362_v45 = vmax.f32 %v244_v41, 0.0  ;;  %v378_v46 = vmax.f32 %v308_v42, 0.0  ;;  %v665_v47 = vpop.f32.mrb[8].mxu0  ;;  %v713_v48 = vpop.f32.mrb[8].mxu1 }
 0x106   :  { %v623_v44 = vpack.c.bf16 %v377_v40, %v377_v40  ;;  %v666_v49 = vpop.f32.mrb[9].mxu0  ;;  %v714_v50 = vpop.f32.mrb[9].mxu1 }
 0x107   :  { %522 = vst.msk [vmem:[%s1065_s3 + $0x8] sm:$0xf] %vm519_vm0, %v607_v43  ;;  %v608_v51 = vpack.c.bf16 %v362_v45, %v362_v45  ;;  %v624_v52 = vpack.c.bf16 %v378_v46, %v378_v46  ;;  %v667_v53 = vadd.f32 %v666_v49, %v665_v47  ;;  %v715_v54 = vadd.f32 %v714_v50, %v713_v48  ;;  %v668_v55 = vpop.f32.mrb[10].mxu0  ;;  %v716_v56 = vpop.f32.mrb[10].mxu1 }
 0x108   :  { %538 = vst.msk [vmem:[%s1065_s3 + $0x48] sm:$0xf] %vm519_vm0, %v623_v44  ;;  %v669_v57 = vpop.f32.mrb[11].mxu0  ;;  %v717_v58 = vpop.f32.mrb[11].mxu1 }
 0x109   :  { %523 = vst.msk [vmem:[%s1065_s3 + $0xc] sm:$0xf] %vm519_vm0, %v608_v51  ;;  %539 = vst.msk [vmem:[%s1065_s3 + $0x4c] sm:$0xf] %vm519_vm0, %v624_v52  ;;  %v249_v59 = vadd.f32 %v667_v53, %v900_v2  ;;  %v313_v60 = vadd.f32 %v715_v54, %v900_v2  ;;  %v670_v61 = vadd.f32 %v669_v57, %v668_v55 }
 0x10a   :  { %v718_v62 = vadd.f32 %v717_v58, %v716_v56 }
 0x10b   :  { %v363_v63 = vmax.f32 %v249_v59, 0.0  ;;  %v379_v0 = vmax.f32 %v313_v60, 0.0  ;;  %v252_v1 = vadd.f32 %v670_v61, %v900_v2 }
 0x10c   :  { %v316_v3 = vadd.f32 %v718_v62, %v900_v2 }
 0x10d   :  { %v609_v4 = vpack.c.bf16 %v363_v63, %v363_v63  ;;  %v625_v5 = vpack.c.bf16 %v379_v0, %v379_v0  ;;  %v364_v6 = vmax.f32 %v252_v1, 0.0  ;;  %v671_v8 = vpop.f32.mrb[12].mxu0  ;;  %v719_v9 = vpop.f32.mrb[12].mxu1 }
 0x10e   :  { %v380_v7 = vmax.f32 %v316_v3, 0.0  ;;  %v672_v10 = vpop.f32.mrb[13].mxu0  ;;  %v720_v11 = vpop.f32.mrb[13].mxu1 }
 0x10f   :  { %524 = vst.msk [vmem:[%s1065_s3 + $0x10] sm:$0xf] %vm519_vm0, %v609_v4  ;;  %540 = vst.msk [vmem:[%s1065_s3 + $0x50] sm:$0xf] %vm519_vm0, %v625_v5  ;;  %v610_v12 = vpack.c.bf16 %v364_v6, %v364_v6  ;;  %v673_v14 = vadd.f32 %v672_v10, %v671_v8  ;;  %v721_v15 = vadd.f32 %v720_v11, %v719_v9  ;;  %v674_v16 = vpop.f32.mrb[14].mxu0  ;;  %v722_v17 = vpop.f32.mrb[14].mxu1 }
 0x110   :  { %v626_v13 = vpack.c.bf16 %v380_v7, %v380_v7  ;;  %v675_v18 = vpop.f32.mrb[15].mxu0  ;;  %v723_v19 = vpop.f32.mrb[15].mxu1 }
 0x111   :  { %525 = vst.msk [vmem:[%s1065_s3 + $0x14] sm:$0xf] %vm519_vm0, %v610_v12  ;;  %v257_v20 = vadd.f32 %v673_v14, %v900_v2  ;;  %v321_v21 = vadd.f32 %v721_v15, %v900_v2  ;;  %v676_v22 = vadd.f32 %v675_v18, %v674_v16  ;;  %v724_v23 = vadd.f32 %v723_v19, %v722_v17 }
 0x112   :  { %541 = vst.msk [vmem:[%s1065_s3 + $0x54] sm:$0xf] %vm519_vm0, %v626_v13 }
 0x113   :  { %v365_v24 = vmax.f32 %v257_v20, 0.0  ;;  %v381_v25 = vmax.f32 %v321_v21, 0.0  ;;  %v260_v26 = vadd.f32 %v676_v22, %v900_v2  ;;  %v324_v27 = vadd.f32 %v724_v23, %v900_v2 }
 0x115   :  { %v611_v28 = vpack.c.bf16 %v365_v24, %v365_v24  ;;  %v627_v29 = vpack.c.bf16 %v381_v25, %v381_v25  ;;  %v366_v30 = vmax.f32 %v260_v26, 0.0  ;;  %v382_v31 = vmax.f32 %v324_v27, 0.0  ;;  %v677_v32 = vpop.f32.mrb[16].mxu0  ;;  %v725_v33 = vpop.f32.mrb[16].mxu1 }
 0x116   :  { %v678_v34 = vpop.f32.mrb[17].mxu0  ;;  %v726_v35 = vpop.f32.mrb[17].mxu1 }
 0x117   :  { %526 = vst.msk [vmem:[%s1065_s3 + $0x18] sm:$0xf] %vm519_vm0, %v611_v28  ;;  %542 = vst.msk [vmem:[%s1065_s3 + $0x58] sm:$0xf] %vm519_vm0, %v627_v29  ;;  %v612_v36 = vpack.c.bf16 %v366_v30, %v366_v30  ;;  %v628_v37 = vpack.c.bf16 %v382_v31, %v382_v31  ;;  %v679_v38 = vadd.f32 %v678_v34, %v677_v32  ;;  %v680_v40 = vpop.f32.mrb[18].mxu0  ;;  %v728_v41 = vpop.f32.mrb[18].mxu1 }
 0x118   :  { %v727_v39 = vadd.f32 %v726_v35, %v725_v33  ;;  %v681_v42 = vpop.f32.mrb[19].mxu0  ;;  %v729_v43 = vpop.f32.mrb[19].mxu1 }
 0x119   :  { %527 = vst.msk [vmem:[%s1065_s3 + $0x1c] sm:$0xf] %vm519_vm0, %v612_v36  ;;  %543 = vst.msk [vmem:[%s1065_s3 + $0x5c] sm:$0xf] %vm519_vm0, %v628_v37  ;;  %v265_v44 = vadd.f32 %v679_v38, %v900_v2  ;;  %v682_v46 = vadd.f32 %v681_v42, %v680_v40  ;;  %v730_v47 = vadd.f32 %v729_v43, %v728_v41 }
 0x11a   :  { %v329_v45 = vadd.f32 %v727_v39, %v900_v2 }
 0x11b   :  { %v367_v48 = vmax.f32 %v265_v44, 0.0  ;;  %v268_v50 = vadd.f32 %v682_v46, %v900_v2  ;;  %v332_v51 = vadd.f32 %v730_v47, %v900_v2 }
 0x11c   :  { %v383_v49 = vmax.f32 %v329_v45, 0.0 }
 0x11d   :  { %v613_v52 = vpack.c.bf16 %v367_v48, %v367_v48  ;;  %v368_v54 = vmax.f32 %v268_v50, 0.0  ;;  %v384_v55 = vmax.f32 %v332_v51, 0.0  ;;  %v683_v56 = vpop.f32.mrb[20].mxu0  ;;  %v731_v57 = vpop.f32.mrb[20].mxu1 }
 0x11e   :  { %v629_v53 = vpack.c.bf16 %v383_v49, %v383_v49  ;;  %v684_v58 = vpop.f32.mrb[21].mxu0  ;;  %v732_v59 = vpop.f32.mrb[21].mxu1 }
 0x11f   :  { %528 = vst.msk [vmem:[%s1065_s3 + $0x20] sm:$0xf] %vm519_vm0, %v613_v52  ;;  %v614_v60 = vpack.c.bf16 %v368_v54, %v368_v54  ;;  %v630_v61 = vpack.c.bf16 %v384_v55, %v384_v55  ;;  %v685_v62 = vadd.f32 %v684_v58, %v683_v56  ;;  %v733_v63 = vadd.f32 %v732_v59, %v731_v57  ;;  %v686_v0 = vpop.f32.mrb[22].mxu0  ;;  %v734_v1 = vpop.f32.mrb[22].mxu1 }
 0x120   :  { %544 = vst.msk [vmem:[%s1065_s3 + $0x60] sm:$0xf] %vm519_vm0, %v629_v53  ;;  %v687_v3 = vpop.f32.mrb[23].mxu0  ;;  %v735_v4 = vpop.f32.mrb[23].mxu1 }
 0x121   :  { %529 = vst.msk [vmem:[%s1065_s3 + $0x24] sm:$0xf] %vm519_vm0, %v614_v60  ;;  %545 = vst.msk [vmem:[%s1065_s3 + $0x64] sm:$0xf] %vm519_vm0, %v630_v61  ;;  %v273_v5 = vadd.f32 %v685_v62, %v900_v2  ;;  %v337_v6 = vadd.f32 %v733_v63, %v900_v2  ;;  %v688_v7 = vadd.f32 %v687_v3, %v686_v0 }
 0x122   :  { %v736_v8 = vadd.f32 %v735_v4, %v734_v1 }
 0x123   :  { %v369_v9 = vmax.f32 %v273_v5, 0.0  ;;  %v385_v10 = vmax.f32 %v337_v6, 0.0  ;;  %v276_v11 = vadd.f32 %v688_v7, %v900_v2 }
 0x124   :  { %v340_v12 = vadd.f32 %v736_v8, %v900_v2 }
 0x125   :  { %v615_v13 = vpack.c.bf16 %v369_v9, %v369_v9  ;;  %v631_v14 = vpack.c.bf16 %v385_v10, %v385_v10  ;;  %v370_v15 = vmax.f32 %v276_v11, 0.0  ;;  %v689_v17 = vpop.f32.mrb[24].mxu0  ;;  %v737_v18 = vpop.f32.mrb[24].mxu1 }
 0x126   :  { %v386_v16 = vmax.f32 %v340_v12, 0.0  ;;  %v690_v19 = vpop.f32.mrb[25].mxu0  ;;  %v738_v20 = vpop.f32.mrb[25].mxu1 }
 0x127   :  { %530 = vst.msk [vmem:[%s1065_s3 + $0x28] sm:$0xf] %vm519_vm0, %v615_v13  ;;  %546 = vst.msk [vmem:[%s1065_s3 + $0x68] sm:$0xf] %vm519_vm0, %v631_v14  ;;  %v616_v21 = vpack.c.bf16 %v370_v15, %v370_v15  ;;  %v691_v23 = vadd.f32 %v690_v19, %v689_v17  ;;  %v739_v24 = vadd.f32 %v738_v20, %v737_v18  ;;  %v692_v25 = vpop.f32.mrb[26].mxu0  ;;  %v740_v26 = vpop.f32.mrb[26].mxu1 }
 0x128   :  { %v632_v22 = vpack.c.bf16 %v386_v16, %v386_v16  ;;  %v693_v27 = vpop.f32.mrb[27].mxu0  ;;  %v741_v28 = vpop.f32.mrb[27].mxu1 }
 0x129   :  { %531 = vst.msk [vmem:[%s1065_s3 + $0x2c] sm:$0xf] %vm519_vm0, %v616_v21  ;;  %v281_v29 = vadd.f32 %v691_v23, %v900_v2  ;;  %v345_v30 = vadd.f32 %v739_v24, %v900_v2  ;;  %v694_v31 = vadd.f32 %v693_v27, %v692_v25  ;;  %v742_v32 = vadd.f32 %v741_v28, %v740_v26 }
 0x12a   :  { %547 = vst.msk [vmem:[%s1065_s3 + $0x6c] sm:$0xf] %vm519_vm0, %v632_v22 }
 0x12b   :  { %v371_v33 = vmax.f32 %v281_v29, 0.0  ;;  %v387_v34 = vmax.f32 %v345_v30, 0.0  ;;  %v284_v35 = vadd.f32 %v694_v31, %v900_v2  ;;  %v348_v36 = vadd.f32 %v742_v32, %v900_v2 }
 0x12d   :  { %v617_v37 = vpack.c.bf16 %v371_v33, %v371_v33  ;;  %v633_v38 = vpack.c.bf16 %v387_v34, %v387_v34  ;;  %v372_v39 = vmax.f32 %v284_v35, 0.0  ;;  %v388_v40 = vmax.f32 %v348_v36, 0.0  ;;  %v695_v41 = vpop.f32.mrb[28].mxu0  ;;  %v743_v42 = vpop.f32.mrb[28].mxu1 }
 0x12e   :  { %v696_v43 = vpop.f32.mrb[29].mxu0  ;;  %v744_v44 = vpop.f32.mrb[29].mxu1 }
 0x12f   :  { %532 = vst.msk [vmem:[%s1065_s3 + $0x30] sm:$0xf] %vm519_vm0, %v617_v37  ;;  %548 = vst.msk [vmem:[%s1065_s3 + $0x70] sm:$0xf] %vm519_vm0, %v633_v38  ;;  %v618_v45 = vpack.c.bf16 %v372_v39, %v372_v39  ;;  %v634_v46 = vpack.c.bf16 %v388_v40, %v388_v40  ;;  %v697_v47 = vadd.f32 %v696_v43, %v695_v41  ;;  %v698_v49 = vpop.f32.mrb[30].mxu0  ;;  %v746_v50 = vpop.f32.mrb[30].mxu1 }
 0x130   :  { %v745_v48 = vadd.f32 %v744_v44, %v743_v42  ;;  %v699_v51 = vpop.f32.mrb[31].mxu0  ;;  %v747_v52 = vpop.f32.mrb[31].mxu1 }
 0x131   :  { %533 = vst.msk [vmem:[%s1065_s3 + $0x34] sm:$0xf] %vm519_vm0, %v618_v45  ;;  %549 = vst.msk [vmem:[%s1065_s3 + $0x74] sm:$0xf] %vm519_vm0, %v634_v46  ;;  %v289_v53 = vadd.f32 %v697_v47, %v900_v2  ;;  %v700_v55 = vadd.f32 %v699_v51, %v698_v49  ;;  %v748_v56 = vadd.f32 %v747_v52, %v746_v50 }
 0x132   :  { %v353_v54 = vadd.f32 %v745_v48, %v900_v2 }
 0x133   :  { %v373_v57 = vmax.f32 %v289_v53, 0.0  ;;  %v292_v59 = vadd.f32 %v700_v55, %v900_v2  ;;  %v356_v60 = vadd.f32 %v748_v56, %v900_v2 }
 0x134   :  { %v389_v58 = vmax.f32 %v353_v54, 0.0 }
 0x135   :  { %v619_v61 = vpack.c.bf16 %v373_v57, %v373_v57  ;;  %v374_v63 = vmax.f32 %v292_v59, 0.0  ;;  %v390_v0 = vmax.f32 %v356_v60, 0.0 }
 0x136   :  { %v635_v62 = vpack.c.bf16 %v389_v58, %v389_v58 }
 0x137   :  { %534 = vst.msk [vmem:[%s1065_s3 + $0x38] sm:$0xf] %vm519_vm0, %v619_v61  ;;  %v620_v1 = vpack.c.bf16 %v374_v63, %v374_v63  ;;  %v636_v3 = vpack.c.bf16 %v390_v0, %v390_v0 }
 0x138   :  { %550 = vst.msk [vmem:[%s1065_s3 + $0x78] sm:$0xf] %vm519_vm0, %v635_v62 }
 0x139   :  { %535 = vst.msk [vmem:[%s1065_s3 + $0x3c] sm:$0xf] %vm519_vm0, %v620_v1  ;;  %551 = vst.msk [vmem:[%s1065_s3 + $0x7c] sm:$0xf] %vm519_vm0, %v636_v3 }

// kernel: atari_a2c_forward.6
= control target key start
LH: loop header
LB: loop body
LE: loop exit
PB: predicated region body
PF: predicated region fallthrough
CT: control target
= control target key end

     0   :  { %vm444_vm0 = vcmask 519168   ;;  %s761_s1 = inlined_call_operand.vmem [shape: bf16[512,64], index: 1, kind: input, shape index: {}]   ;;  %s762_s0 = inlined_call_operand.vmem [shape: bf16[32,512], index: 0, kind: input, shape index: {}]   ;;  %s763_s2 = inlined_call_operand.vmem [shape: f32[1,64], index: 2, kind: input, shape index: {}]   ;;  %s764_s3 = inlined_call_operand.vmem [shape: bf16[32,64], index: 3, kind: output, shape index: {}]  }
   0x1   :  { %v558_v0 = vld [vmem:[%s761_s1 + $0x40] sm:$0xff]   ;;  %v562_v4 = vld [vmem:[%s761_s1 + $0x48] sm:$0xff]   ;;  %v566_v8 = vld [vmem:[%s761_s1 + $0x50] sm:$0xff]  }
   0x2   :  { %v559_v1 = vld [vmem:[%s761_s1 + $0xc0] sm:$0xff]   ;;  %502 = vmatprep.subr.bf16.mxu0 %v558_v0  ;;  %v563_v5 = vld [vmem:[%s761_s1 + $0xc8] sm:$0xff]   ;;  %v567_v9 = vld [vmem:[%s761_s1 + $0xd0] sm:$0xff]  }
   0x3   :  { %v560_v2 = vld [vmem:[%s761_s1] sm:$0xff]   ;;  %530 = vmatprep.subr.bf16.mxu1 %v559_v1  ;;  %v564_v6 = vld [vmem:[%s761_s1 + $0x8] sm:$0xff]   ;;  %v568_v10 = vld [vmem:[%s761_s1 + $0x10] sm:$0xff]  }
   0x4   :  { %v561_v3 = vld [vmem:[%s761_s1 + $0x80] sm:$0xff]   ;;  %503 = vmatpush3.bf16.msra.mxu0 %v560_v2  ;;  %v565_v7 = vld [vmem:[%s761_s1 + $0x88] sm:$0xff]   ;;  %v569_v11 = vld [vmem:[%s761_s1 + $0x90] sm:$0xff]  }
   0x5   :  { %531 = vmatpush3.bf16.msra.mxu1 %v561_v3  ;;  %504 = vmatprep.subr.bf16.mxu0 %v562_v4  ;;  %v570_v12 = vld [vmem:[%s761_s1 + $0x58] sm:$0xff]   ;;  %v574_v16 = vld [vmem:[%s761_s1 + $0x60] sm:$0xff]   ;;  %v578_v20 = vld [vmem:[%s761_s1 + $0x68] sm:$0xff]  }
   0x6   :  { %532 = vmatprep.subr.bf16.mxu1 %v563_v5  ;;  %v571_v13 = vld [vmem:[%s761_s1 + $0xd8] sm:$0xff]   ;;  %v575_v17 = vld [vmem:[%s761_s1 + $0xe0] sm:$0xff]   ;;  %v579_v21 = vld [vmem:[%s761_s1 + $0xe8] sm:$0xff]  }
   0x7   :  { %v572_v14 = vld [vmem:[%s761_s1 + $0x18] sm:$0xff]   ;;  %v576_v18 = vld [vmem:[%s761_s1 + $0x20] sm:$0xff]   ;;  %v580_v22 = vld [vmem:[%s761_s1 + $0x28] sm:$0xff]  }
   0x8   :  { %505 = vmatpush3.bf16.msra.mxu0 %v564_v6  ;;  %v573_v15 = vld [vmem:[%s761_s1 + $0x98] sm:$0xff]   ;;  %v577_v19 = vld [vmem:[%s761_s1 + $0xa0] sm:$0xff]   ;;  %v581_v23 = vld [vmem:[%s761_s1 + $0xa8] sm:$0xff]  }
   0x9   :  { %533 = vmatpush3.bf16.msra.mxu1 %v565_v7  ;;  %506 = vmatprep.subr.bf16.mxu0 %v566_v8  ;;  %v582_v24 = vld [vmem:[%s761_s1 + $0x70] sm:$0xff]   ;;  %v586_v28 = vld [vmem:[%s761_s1 + $0x78] sm:$0xff]   ;;  %v453_v42 = vld [vmem:[%s763_s2] ss:$0 sm:$0xff] }
   0xa   :  { %534 = vmatprep.subr.bf16.mxu1 %v567_v9  ;;  %v583_v25 = vld [vmem:[%s761_s1 + $0xf0] sm:$0xff]   ;;  %v587_v29 = vld [vmem:[%s761_s1 + $0xf8] sm:$0xff]  }
   0xb   :  { %v584_v26 = vld [vmem:[%s761_s1 + $0x30] sm:$0xff]   ;;  %v588_v30 = vld [vmem:[%s761_s1 + $0x38] sm:$0xff]  }
   0xc   :  { %507 = vmatpush3.bf16.msra.mxu0 %v568_v10  ;;  %v585_v27 = vld [vmem:[%s761_s1 + $0xb0] sm:$0xff]   ;;  %v589_v31 = vld [vmem:[%s761_s1 + $0xb8] sm:$0xff]  }
   0xd   :  { %535 = vmatpush3.bf16.msra.mxu1 %v569_v11  ;;  %508 = vmatprep.subr.bf16.mxu0 %v570_v12  ;;  %v590_v32 = vld [vmem:[%s762_s0] ss:$16 sps:$4 sm:$0xff]   ;;  %v592_v33 = vld [vmem:[%s762_s0 + $0x4] ss:$16 sps:$4 sm:$0xff]   ;;  %v593_v34 = vld [vmem:[%s762_s0 + $0x8] ss:$16 sps:$4 sm:$0xff]  }
   0xe   :  { %536 = vmatprep.subr.bf16.mxu1 %v571_v13  ;;  %v595_v35 = vld [vmem:[%s762_s0 + $0xc] ss:$16 sps:$4 sm:$0xff]   ;;  %358 = vmatprep.mubr.bf16.mxu0 %v592_v33  ;;  %v596_v36 = vld [vmem:[%s762_s0 + $0x24] ss:$16 sps:$4 sm:$0xff]   ;;  %v600_v38 = vld [vmem:[%s762_s0 + $0x20] ss:$16 sps:$4 sm:$0xff]  }
   0xf   :  { %407 = vmatprep.mubr.bf16.mxu1 %v595_v35  ;;  %v598_v37 = vld [vmem:[%s762_s0 + $0x2c] ss:$16 sps:$4 sm:$0xff]   ;;  %v601_v39 = vld [vmem:[%s762_s0 + $0x28] ss:$16 sps:$4 sm:$0xff]  }
  0x10   :  { %509 = vmatpush3.bf16.msra.mxu0 %v572_v14 }
  0x11   :  { %537 = vmatpush3.bf16.msra.mxu1 %v573_v15  ;;  %510 = vmatprep.subr.bf16.mxu0 %v574_v16 }
  0x12   :  { %538 = vmatprep.subr.bf16.mxu1 %v575_v17 }
  0x14   :  { %511 = vmatpush3.bf16.msra.mxu0 %v576_v18 }
  0x15   :  { %539 = vmatpush3.bf16.msra.mxu1 %v577_v19  ;;  %512 = vmatprep.subr.bf16.mxu0 %v578_v20 }
  0x16   :  { %540 = vmatprep.subr.bf16.mxu1 %v579_v21 }
  0x18   :  { %513 = vmatpush3.bf16.msra.mxu0 %v580_v22 }
  0x19   :  { %541 = vmatpush3.bf16.msra.mxu1 %v581_v23  ;;  %514 = vmatprep.subr.bf16.mxu0 %v582_v24 }
  0x1a   :  { %542 = vmatprep.subr.bf16.mxu1 %v583_v25 }
  0x1c   :  { %515 = vmatpush3.bf16.msra.mxu0 %v584_v26 }
  0x1d   :  { %543 = vmatpush3.bf16.msra.mxu1 %v585_v27  ;;  %516 = vmatprep.subr.bf16.mxu0 %v586_v28 }
  0x1e   :  { %544 = vmatprep.subr.bf16.mxu1 %v587_v29 }
  0x20   :  { %517 = vmatpush3.bf16.msra.mxu0 %v588_v30 }
  0x21   :  { %545 = vmatpush3.bf16.msra.mxu1 %v589_v31 }
  0x23   :  { %359 = vmatmul.mubr.bf16.vlgmr.msra.gmra.mrb[0].mxu0 %v590_v32 }
  0x24   :  { %408 = vmatmul.mubr.bf16.vlgmr.msra.gmra.mrb[0].mxu1 %v593_v34  ;;  %366 = vmatprep.mubr.bf16.mxu0 %v596_v36 }
  0x25   :  { %415 = vmatprep.mubr.bf16.mxu1 %v598_v37 }
  0x2b   :  { %367 = vmatmul.mubr.bf16.gmra.mrb[4].mxu0 %v600_v38 }
  0x2c   :  { %416 = vmatmul.mubr.bf16.gmra.mrb[4].mxu1 %v601_v39 }
  0xf6   :  { %v518_v40 = vpop.f32.mrb[0].mxu0 }
  0xf7   :  { %v546_v41 = vpop.f32.mrb[0].mxu1  ;;  %v519_v43 = vpop.f32.mrb[1].mxu0 }
  0xf8   :  { %v520_v44 = vadd.f32 %v519_v43, %v518_v40  ;;  %v547_v45 = vpop.f32.mrb[1].mxu1  ;;  %v521_v46 = vpop.f32.mrb[2].mxu0 }
  0xf9   :  { %v548_v47 = vadd.f32 %v547_v45, %v546_v41  ;;  %v549_v48 = vpop.f32.mrb[2].mxu1  ;;  %v522_v49 = vpop.f32.mrb[3].mxu0 }
  0xfa   :  { %v361_v50 = vadd.f32 %v520_v44, %v453_v42  ;;  %v523_v51 = vadd.f32 %v522_v49, %v521_v46  ;;  %v550_v52 = vpop.f32.mrb[3].mxu1 }
  0xfb   :  { %v551_v53 = vadd.f32 %v550_v52, %v549_v48 }
  0xfc   :  { %v410_v54 = vadd.f32 %v548_v47, %v361_v50  ;;  %v364_v55 = vadd.f32 %v523_v51, %v453_v42 }
  0xfe   :  { %v424_v56 = vmax.f32 %v410_v54, 0.0  ;;  %v413_v57 = vadd.f32 %v551_v53, %v364_v55  ;;  %v524_v58 = vpop.f32.mrb[4].mxu0 }
  0xff   :  { %v552_v59 = vpop.f32.mrb[4].mxu1  ;;  %v525_v60 = vpop.f32.mrb[5].mxu0 }
 0x100   :  { %v498_v61 = vpack.c.bf16 %v424_v56, %v424_v56  ;;  %v425_v62 = vmax.f32 %v413_v57, 0.0  ;;  %v526_v63 = vadd.f32 %v525_v60, %v524_v58  ;;  %v553_v0 = vpop.f32.mrb[5].mxu1  ;;  %v527_v1 = vpop.f32.mrb[6].mxu0 }
 0x101   :  { %v554_v2 = vadd.f32 %v553_v0, %v552_v59  ;;  %v555_v3 = vpop.f32.mrb[6].mxu1  ;;  %v528_v4 = vpop.f32.mrb[7].mxu0 }
 0x102   :  { %445 = vst.msk [vmem:[%s764_s3] sm:$0xf] %vm444_vm0, %v498_v61  ;;  %v499_v5 = vpack.c.bf16 %v425_v62, %v425_v62  ;;  %v369_v6 = vadd.f32 %v526_v63, %v453_v42  ;;  %v529_v7 = vadd.f32 %v528_v4, %v527_v1  ;;  %v556_v8 = vpop.f32.mrb[7].mxu1 }
 0x103   :  { %v557_v9 = vadd.f32 %v556_v8, %v555_v3 }
 0x104   :  { %446 = vst.msk [vmem:[%s764_s3 + $0x4] sm:$0xf] %vm444_vm0, %v499_v5  ;;  %v418_v10 = vadd.f32 %v554_v2, %v369_v6  ;;  %v372_v11 = vadd.f32 %v529_v7, %v453_v42 }
 0x106   :  { %v426_v12 = vmax.f32 %v418_v10, 0.0  ;;  %v421_v13 = vadd.f32 %v557_v9, %v372_v11 }
 0x108   :  { %v500_v14 = vpack.c.bf16 %v426_v12, %v426_v12  ;;  %v427_v15 = vmax.f32 %v421_v13, 0.0 }
 0x10a   :  { %447 = vst.msk [vmem:[%s764_s3 + $0x8] sm:$0xf] %vm444_vm0, %v500_v14  ;;  %v501_v16 = vpack.c.bf16 %v427_v15, %v427_v15 }
 0x10c   :  { %448 = vst.msk [vmem:[%s764_s3 + $0xc] sm:$0xf] %vm444_vm0, %v501_v16 }

// kernel: atari_a2c_forward.8
= control target key start
LH: loop header
LB: loop body
LE: loop exit
PB: predicated region body
PF: predicated region fallthrough
CT: control target
= control target key end

     0   :  { %s1889_s1 = inlined_call_operand.vmem [shape: bf16[256,1024], index: 1, kind: input, shape index: {}]   ;;  %s1890_s0 = inlined_call_operand.vmem [shape: bf16[32,256], index: 0, kind: input, shape index: {}]   ;;  %s1891_s2 = inlined_call_operand.vmem [shape: f32[1,1024], index: 2, kind: input, shape index: {}]   ;;  %s1892_s3 = inlined_call_operand.vmem [shape: bf16[32,1024], index: 3, kind: output, shape index: {}]  }
   0x1   :  { %v18_v0 = vld [vmem:[%s1889_s1] sm:$0xff]  ;;  %v19_v2 = vld [vmem:[%s1889_s1 + $0x8] sm:$0xff] }
   0x2   :  { %v22_v1 = vld [vmem:[%s1889_s1 + $0x20] sm:$0xff]  ;;  %v23_v4 = vld [vmem:[%s1889_s1 + $0x28] sm:$0xff] }
   0x3   :  { %v1213_v3 = vcombine.high %v18_v0, %v22_v1  ;;  %v1212_v5 = vcombine.low %v18_v0, %v22_v1  ;;  %v26_v6 = vld [vmem:[%s1889_s1 + $0x40] sm:$0xff]  ;;  %v1215_v8 = vcombine.high %v19_v2, %v23_v4  ;;  %v1214_v9 = vcombine.low %v19_v2, %v23_v4  ;;  %v27_v11 = vld [vmem:[%s1889_s1 + $0x48] sm:$0xff] }
   0x4   :  { %v30_v7 = vld [vmem:[%s1889_s1 + $0x60] sm:$0xff]  ;;  %v31_v12 = vld [vmem:[%s1889_s1 + $0x68] sm:$0xff] }
   0x5   :  { %v1221_v10 = vcombine.high %v26_v6, %v30_v7  ;;  %v34_v13 = vld [vmem:[%s1889_s1 + $0x80] sm:$0xff]  ;;  %848 = vmatprep.subr.bf16.mxu0 %v1213_v3  ;;  %v1223_v14 = vcombine.high %v27_v11, %v31_v12  ;;  %v35_v16 = vld [vmem:[%s1889_s1 + $0x88] sm:$0xff]  ;;  %901 = vmatprep.subr.bf16.mxu1 %v1215_v8  ;;  %v1220_v18 = vcombine.low %v26_v6, %v30_v7 }
   0x6   :  { %v38_v15 = vld [vmem:[%s1889_s1 + $0xa0] sm:$0xff]  ;;  %v39_v17 = vld [vmem:[%s1889_s1 + $0xa8] sm:$0xff]  ;;  %849 = vmatpush1.bf16.msra.mxu0 %v1212_v5  ;;  %902 = vmatpush1.bf16.msra.mxu1 %v1214_v9  ;;  %v1222_v19 = vcombine.low %v27_v11, %v31_v12 }
   0x7   :  { %850 = vmatprep.subr.bf16.mxu0 %v1221_v10  ;;  %v1229_v20 = vcombine.high %v34_v13, %v38_v15  ;;  %903 = vmatprep.subr.bf16.mxu1 %v1223_v14  ;;  %v1231_v21 = vcombine.high %v35_v16, %v39_v17  ;;  %v42_v22 = vld [vmem:[%s1889_s1 + $0xc0] sm:$0xff]  ;;  %v43_v24 = vld [vmem:[%s1889_s1 + $0xc8] sm:$0xff]  ;;  %v1228_v26 = vcombine.low %v34_v13, %v38_v15 }
   0x8   :  { %v46_v23 = vld [vmem:[%s1889_s1 + $0xe0] sm:$0xff]  ;;  %v47_v25 = vld [vmem:[%s1889_s1 + $0xe8] sm:$0xff]  ;;  %v1230_v27 = vcombine.low %v35_v16, %v39_v17 }
   0x9   :  { %v1237_v28 = vcombine.high %v42_v22, %v46_v23  ;;  %v1239_v29 = vcombine.high %v43_v24, %v47_v25  ;;  %v50_v30 = vld [vmem:[%s1889_s1 + $0x100] sm:$0xff]  ;;  %v51_v32 = vld [vmem:[%s1889_s1 + $0x108] sm:$0xff]  ;;  %v1236_v34 = vcombine.low %v42_v22, %v46_v23  ;;  %v1238_v35 = vcombine.low %v43_v24, %v47_v25 }
   0xa   :  { %851 = vmatpush1.bf16.msra.mxu0 %v1220_v18  ;;  %904 = vmatpush1.bf16.msra.mxu1 %v1222_v19  ;;  %v54_v31 = vld [vmem:[%s1889_s1 + $0x120] sm:$0xff]  ;;  %v55_v33 = vld [vmem:[%s1889_s1 + $0x128] sm:$0xff] }
   0xb   :  { %852 = vmatprep.subr.bf16.mxu0 %v1229_v20  ;;  %905 = vmatprep.subr.bf16.mxu1 %v1231_v21  ;;  %v1245_v36 = vcombine.high %v50_v30, %v54_v31  ;;  %v1247_v37 = vcombine.high %v51_v32, %v55_v33  ;;  %v58_v38 = vld [vmem:[%s1889_s1 + $0x140] sm:$0xff]  ;;  %v59_v40 = vld [vmem:[%s1889_s1 + $0x148] sm:$0xff]  ;;  %v1244_v42 = vcombine.low %v50_v30, %v54_v31 }
   0xc   :  { %v62_v39 = vld [vmem:[%s1889_s1 + $0x160] sm:$0xff]  ;;  %v63_v41 = vld [vmem:[%s1889_s1 + $0x168] sm:$0xff]  ;;  %v1246_v43 = vcombine.low %v51_v32, %v55_v33 }
   0xd   :  { %v1253_v44 = vcombine.high %v58_v38, %v62_v39  ;;  %v1255_v45 = vcombine.high %v59_v40, %v63_v41  ;;  %v66_v46 = vld [vmem:[%s1889_s1 + $0x180] sm:$0xff]  ;;  %v67_v48 = vld [vmem:[%s1889_s1 + $0x188] sm:$0xff]  ;;  %v1252_v50 = vcombine.low %v58_v38, %v62_v39  ;;  %v1254_v51 = vcombine.low %v59_v40, %v63_v41 }
   0xe   :  { %853 = vmatpush1.bf16.msra.mxu0 %v1228_v26  ;;  %906 = vmatpush1.bf16.msra.mxu1 %v1230_v27  ;;  %v70_v47 = vld [vmem:[%s1889_s1 + $0x1a0] sm:$0xff]  ;;  %v71_v49 = vld [vmem:[%s1889_s1 + $0x1a8] sm:$0xff] }
   0xf   :  { %854 = vmatprep.subr.bf16.mxu0 %v1237_v28  ;;  %907 = vmatprep.subr.bf16.mxu1 %v1239_v29  ;;  %v1261_v52 = vcombine.high %v66_v46, %v70_v47  ;;  %v1263_v53 = vcombine.high %v67_v48, %v71_v49  ;;  %v74_v54 = vld [vmem:[%s1889_s1 + $0x1c0] sm:$0xff]  ;;  %v75_v57 = vld [vmem:[%s1889_s1 + $0x1c8] sm:$0xff]  ;;  %v1260_v59 = vcombine.low %v66_v46, %v70_v47 }
  0x10   :  { %v78_v55 = vld [vmem:[%s1889_s1 + $0x1e0] sm:$0xff]  ;;  %v79_v58 = vld [vmem:[%s1889_s1 + $0x1e8] sm:$0xff]  ;;  %v1262_v60 = vcombine.low %v67_v48, %v71_v49 }
  0x11   :  { %v1491_v56 = vld [vmem:[%s1890_s0 + $0x4] ss:$8 sps:$4 sm:$0xff]   ;;  %v1269_v61 = vcombine.high %v74_v54, %v78_v55  ;;  %v1271_v62 = vcombine.high %v75_v57, %v79_v58  ;;  %v1268_v3 = vcombine.low %v74_v54, %v78_v55  ;;  %v1270_v4 = vcombine.low %v75_v57, %v79_v58 }
  0x12   :  { %855 = vmatpush1.bf16.msra.mxu0 %v1236_v34  ;;  %908 = vmatpush1.bf16.msra.mxu1 %v1238_v35  ;;  %v82_v63 = vld [vmem:[%s1889_s1 + $0x200] sm:$0xff]  ;;  %v83_v1 = vld [vmem:[%s1889_s1 + $0x208] sm:$0xff] }
  0x13   :  { %856 = vmatprep.subr.bf16.mxu0 %v1245_v36  ;;  %909 = vmatprep.subr.bf16.mxu1 %v1247_v37  ;;  %v86_v0 = vld [vmem:[%s1889_s1 + $0x220] sm:$0xff]  ;;  %v87_v2 = vld [vmem:[%s1889_s1 + $0x228] sm:$0xff] }
  0x14   :  { %880 = vmatprep.mubr.bf16.mxu0 %v1491_v56  ;;  %933 = vmatprep.mubr.bf16.mxu1 %v1491_v56  ;;  %v1277_v5 = vcombine.high %v82_v63, %v86_v0  ;;  %v1279_v6 = vcombine.high %v83_v1, %v87_v2  ;;  %v90_v7 = vld [vmem:[%s1889_s1 + $0x240] sm:$0xff]  ;;  %v91_v9 = vld [vmem:[%s1889_s1 + $0x248] sm:$0xff]  ;;  %v1276_v11 = vcombine.low %v82_v63, %v86_v0  ;;  %v20_v0 = vld [vmem:[%s1889_s1 + $0x10] sm:$0xff] }
  0x15   :  { %v94_v8 = vld [vmem:[%s1889_s1 + $0x260] sm:$0xff]  ;;  %v95_v10 = vld [vmem:[%s1889_s1 + $0x268] sm:$0xff]  ;;  %v1278_v12 = vcombine.low %v83_v1, %v87_v2  ;;  %v24_v1 = vld [vmem:[%s1889_s1 + $0x30] sm:$0xff] }
  0x16   :  { %857 = vmatpush1.bf16.msra.mxu0 %v1244_v42  ;;  %910 = vmatpush1.bf16.msra.mxu1 %v1246_v43  ;;  %v1285_v13 = vcombine.high %v90_v7, %v94_v8  ;;  %v1287_v14 = vcombine.high %v91_v9, %v95_v10  ;;  %v98_v15 = vld [vmem:[%s1889_s1 + $0x280] sm:$0xff]  ;;  %v99_v17 = vld [vmem:[%s1889_s1 + $0x288] sm:$0xff]  ;;  %v1284_v19 = vcombine.low %v90_v7, %v94_v8  ;;  %v21_v2 = vld [vmem:[%s1889_s1 + $0x18] sm:$0xff] }
  0x17   :  { %858 = vmatprep.subr.bf16.mxu0 %v1253_v44  ;;  %911 = vmatprep.subr.bf16.mxu1 %v1255_v45  ;;  %v102_v16 = vld [vmem:[%s1889_s1 + $0x2a0] sm:$0xff]  ;;  %v103_v18 = vld [vmem:[%s1889_s1 + $0x2a8] sm:$0xff]  ;;  %v1286_v20 = vcombine.low %v91_v9, %v95_v10  ;;  %v28_v8 = vld [vmem:[%s1889_s1 + $0x50] sm:$0xff] }
  0x18   :  { %v1293_v21 = vcombine.high %v98_v15, %v102_v16  ;;  %v1295_v22 = vcombine.high %v99_v17, %v103_v18  ;;  %v106_v23 = vld [vmem:[%s1889_s1 + $0x2c0] sm:$0xff]  ;;  %v107_v25 = vld [vmem:[%s1889_s1 + $0x2c8] sm:$0xff]  ;;  %v1292_v27 = vcombine.low %v98_v15, %v102_v16  ;;  %v1294_v28 = vcombine.low %v99_v17, %v103_v18  ;;  %v32_v9 = vld [vmem:[%s1889_s1 + $0x70] sm:$0xff] }
  0x19   :  { %v110_v24 = vld [vmem:[%s1889_s1 + $0x2e0] sm:$0xff]  ;;  %v111_v26 = vld [vmem:[%s1889_s1 + $0x2e8] sm:$0xff]  ;;  %v1225_v15 = vcombine.high %v28_v8, %v32_v9  ;;  %v36_v17 = vld [vmem:[%s1889_s1 + $0x90] sm:$0xff] }
  0x1a   :  { %859 = vmatpush1.bf16.msra.mxu0 %v1252_v50  ;;  %912 = vmatpush1.bf16.msra.mxu1 %v1254_v51  ;;  %v1301_v29 = vcombine.high %v106_v23, %v110_v24  ;;  %v1303_v30 = vcombine.high %v107_v25, %v111_v26  ;;  %v114_v31 = vld [vmem:[%s1889_s1 + $0x300] sm:$0xff]  ;;  %v115_v33 = vld [vmem:[%s1889_s1 + $0x308] sm:$0xff]  ;;  %v1300_v35 = vcombine.low %v106_v23, %v110_v24  ;;  %v40_v18 = vld [vmem:[%s1889_s1 + $0xb0] sm:$0xff] }
  0x1b   :  { %860 = vmatprep.subr.bf16.mxu0 %v1261_v52  ;;  %913 = vmatprep.subr.bf16.mxu1 %v1263_v53  ;;  %v118_v32 = vld [vmem:[%s1889_s1 + $0x320] sm:$0xff]  ;;  %v119_v34 = vld [vmem:[%s1889_s1 + $0x328] sm:$0xff]  ;;  %v1302_v36 = vcombine.low %v107_v25, %v111_v26  ;;  %v1233_v24 = vcombine.high %v36_v17, %v40_v18  ;;  %v44_v26 = vld [vmem:[%s1889_s1 + $0xd0] sm:$0xff] }
  0x1c   :  { %v1309_v37 = vcombine.high %v114_v31, %v118_v32  ;;  %v1311_v38 = vcombine.high %v115_v33, %v119_v34  ;;  %v122_v39 = vld [vmem:[%s1889_s1 + $0x340] sm:$0xff]  ;;  %v123_v41 = vld [vmem:[%s1889_s1 + $0x348] sm:$0xff]  ;;  %v1308_v43 = vcombine.low %v114_v31, %v118_v32  ;;  %v1310_v44 = vcombine.low %v115_v33, %v119_v34 }
  0x1d   :  { %v126_v40 = vld [vmem:[%s1889_s1 + $0x360] sm:$0xff]  ;;  %v127_v42 = vld [vmem:[%s1889_s1 + $0x368] sm:$0xff]  ;;  %v1232_v31 = vcombine.low %v36_v17, %v40_v18 }
  0x1e   :  { %861 = vmatpush1.bf16.msra.mxu0 %v1260_v59  ;;  %914 = vmatpush1.bf16.msra.mxu1 %v1262_v60  ;;  %v1317_v45 = vcombine.high %v122_v39, %v126_v40  ;;  %v1319_v46 = vcombine.high %v123_v41, %v127_v42  ;;  %v130_v47 = vld [vmem:[%s1889_s1 + $0x380] sm:$0xff]  ;;  %v131_v49 = vld [vmem:[%s1889_s1 + $0x388] sm:$0xff]  ;;  %v1316_v51 = vcombine.low %v122_v39, %v126_v40 }
  0x1f   :  { %862 = vmatprep.subr.bf16.mxu0 %v1269_v61  ;;  %915 = vmatprep.subr.bf16.mxu1 %v1271_v62  ;;  %v134_v48 = vld [vmem:[%s1889_s1 + $0x3a0] sm:$0xff]  ;;  %v135_v50 = vld [vmem:[%s1889_s1 + $0x3a8] sm:$0xff]  ;;  %v1318_v52 = vcombine.low %v123_v41, %v127_v42 }
  0x20   :  { %v1325_v53 = vcombine.high %v130_v47, %v134_v48  ;;  %v1327_v54 = vcombine.high %v131_v49, %v135_v50  ;;  %v138_v55 = vld [vmem:[%s1889_s1 + $0x3c0] sm:$0xff]  ;;  %v139_v58 = vld [vmem:[%s1889_s1 + $0x3c8] sm:$0xff]  ;;  %v1324_v60 = vcombine.low %v130_v47, %v134_v48  ;;  %v1326_v61 = vcombine.low %v131_v49, %v135_v50 }
  0x21   :  { %v142_v57 = vld [vmem:[%s1889_s1 + $0x3e0] sm:$0xff]  ;;  %v143_v59 = vld [vmem:[%s1889_s1 + $0x3e8] sm:$0xff] }
  0x22   :  { %863 = vmatpush1.bf16.msra.mxu0 %v1268_v3  ;;  %916 = vmatpush1.bf16.msra.mxu1 %v1270_v4  ;;  %v1333_v62 = vcombine.high %v138_v55, %v142_v57  ;;  %v1335_v63 = vcombine.high %v139_v58, %v143_v59  ;;  %v25_v3 = vld [vmem:[%s1889_s1 + $0x38] sm:$0xff]  ;;  %v1332_v4 = vcombine.low %v138_v55, %v142_v57  ;;  %v1618_v10 = vld [vmem:[%s1890_s0] ss:$8 sps:$4 sm:$0xff]  }
  0x23   :  { %864 = vmatprep.subr.bf16.mxu0 %v1277_v5  ;;  %917 = vmatprep.subr.bf16.mxu1 %v1279_v6  ;;  %v1334_v5 = vcombine.low %v139_v58, %v143_v59  ;;  %v1217_v6 = vcombine.high %v20_v0, %v24_v1  ;;  %v1219_v7 = vcombine.high %v21_v2, %v25_v3  ;;  %v76_v59 = vld [vmem:[%s1889_s1 + $0x1d0] sm:$0xff] }
  0x26   :  { %865 = vmatpush1.bf16.msra.mxu0 %v1276_v11  ;;  %918 = vmatpush1.bf16.msra.mxu1 %v1278_v12  ;;  %v29_v11 = vld [vmem:[%s1889_s1 + $0x58] sm:$0xff] }
  0x27   :  { %866 = vmatprep.subr.bf16.mxu0 %v1285_v13  ;;  %919 = vmatprep.subr.bf16.mxu1 %v1287_v14  ;;  %v33_v12 = vld [vmem:[%s1889_s1 + $0x78] sm:$0xff]  ;;  %v1216_v13 = vcombine.low %v20_v0, %v24_v1  ;;  %v1218_v14 = vcombine.low %v21_v2, %v25_v3  ;;  %v84_v3 = vld [vmem:[%s1889_s1 + $0x210] sm:$0xff] }
  0x28   :  { %v1227_v16 = vcombine.high %v29_v11, %v33_v12  ;;  %v1226_v23 = vcombine.low %v29_v11, %v33_v12  ;;  %v92_v12 = vld [vmem:[%s1889_s1 + $0x250] sm:$0xff] }
  0x2a   :  { %867 = vmatpush1.bf16.msra.mxu0 %v1284_v19  ;;  %920 = vmatpush1.bf16.msra.mxu1 %v1286_v20  ;;  %v1635_v19 = vld [vmem:[%s1890_s0 + $0x14] ss:$8 sps:$4 sm:$0xff]  }
  0x2b   :  { %868 = vmatprep.subr.bf16.mxu0 %v1293_v21  ;;  %921 = vmatprep.subr.bf16.mxu1 %v1295_v22  ;;  %v37_v20 = vld [vmem:[%s1889_s1 + $0x98] sm:$0xff]  ;;  %v1224_v22 = vcombine.low %v28_v8, %v32_v9 }
  0x2c   :  { %v41_v21 = vld [vmem:[%s1889_s1 + $0xb8] sm:$0xff] }
  0x2d   :  { %v1235_v25 = vcombine.high %v37_v20, %v41_v21  ;;  %v1234_v32 = vcombine.low %v37_v20, %v41_v21  ;;  %v100_v21 = vld [vmem:[%s1889_s1 + $0x290] sm:$0xff] }
  0x2e   :  { %869 = vmatpush1.bf16.msra.mxu0 %v1292_v27  ;;  %922 = vmatpush1.bf16.msra.mxu1 %v1294_v28  ;;  %v48_v27 = vld [vmem:[%s1889_s1 + $0xf0] sm:$0xff]  ;;  %v45_v28 = vld [vmem:[%s1889_s1 + $0xd8] sm:$0xff] }
  0x2f   :  { %870 = vmatprep.subr.bf16.mxu0 %v1301_v29  ;;  %923 = vmatprep.subr.bf16.mxu1 %v1303_v30  ;;  %v49_v29 = vld [vmem:[%s1889_s1 + $0xf8] sm:$0xff]  ;;  %v1241_v33 = vcombine.high %v44_v26, %v48_v27  ;;  %v1240_v39 = vcombine.low %v44_v26, %v48_v27 }
  0x30   :  { %v1662_v30 = vld [vmem:[%s1890_s0 + $0x10] ss:$8 sps:$4 sm:$0xff]   ;;  %v1243_v34 = vcombine.high %v45_v28, %v49_v29  ;;  %v1242_v40 = vcombine.low %v45_v28, %v49_v29 }
  0x31   :  { %v108_v29 = vld [vmem:[%s1889_s1 + $0x2d0] sm:$0xff] }
  0x32   :  { %871 = vmatpush1.bf16.msra.mxu0 %v1300_v35  ;;  %924 = vmatpush1.bf16.msra.mxu1 %v1302_v36  ;;  %v52_v35 = vld [vmem:[%s1889_s1 + $0x110] sm:$0xff] }
  0x33   :  { %872 = vmatprep.subr.bf16.mxu0 %v1309_v37  ;;  %925 = vmatprep.subr.bf16.mxu1 %v1311_v38  ;;  %v56_v36 = vld [vmem:[%s1889_s1 + $0x130] sm:$0xff]  ;;  %v53_v37 = vld [vmem:[%s1889_s1 + $0x118] sm:$0xff] }
  0x34   :  { %v57_v38 = vld [vmem:[%s1889_s1 + $0x138] sm:$0xff]  ;;  %v1249_v41 = vcombine.high %v52_v35, %v56_v36  ;;  %v1248_v47 = vcombine.low %v52_v35, %v56_v36 }
  0x35   :  { %v1251_v42 = vcombine.high %v53_v37, %v57_v38  ;;  %v1250_v48 = vcombine.low %v53_v37, %v57_v38  ;;  %v116_v38 = vld [vmem:[%s1889_s1 + $0x310] sm:$0xff] }
  0x36   :  { %873 = vmatpush1.bf16.msra.mxu0 %v1308_v43  ;;  %926 = vmatpush1.bf16.msra.mxu1 %v1310_v44  ;;  %v60_v43 = vld [vmem:[%s1889_s1 + $0x150] sm:$0xff] }
  0x37   :  { %874 = vmatprep.subr.bf16.mxu0 %v1317_v45  ;;  %927 = vmatprep.subr.bf16.mxu1 %v1319_v46  ;;  %v64_v44 = vld [vmem:[%s1889_s1 + $0x170] sm:$0xff]  ;;  %v61_v45 = vld [vmem:[%s1889_s1 + $0x158] sm:$0xff] }
  0x38   :  { %v65_v46 = vld [vmem:[%s1889_s1 + $0x178] sm:$0xff]  ;;  %v1257_v49 = vcombine.high %v60_v43, %v64_v44 }
  0x39   :  { %v1259_v50 = vcombine.high %v61_v45, %v65_v46  ;;  %v1258_v55 = vcombine.low %v61_v45, %v65_v46  ;;  %v124_v46 = vld [vmem:[%s1889_s1 + $0x350] sm:$0xff] }
  0x3a   :  { %875 = vmatpush1.bf16.msra.mxu0 %v1316_v51  ;;  %928 = vmatpush1.bf16.msra.mxu1 %v1318_v52  ;;  %v68_v51 = vld [vmem:[%s1889_s1 + $0x190] sm:$0xff] }
  0x3b   :  { %876 = vmatprep.subr.bf16.mxu0 %v1325_v53  ;;  %929 = vmatprep.subr.bf16.mxu1 %v1327_v54  ;;  %v72_v52 = vld [vmem:[%s1889_s1 + $0x1b0] sm:$0xff]  ;;  %v73_v53 = vld [vmem:[%s1889_s1 + $0x1b8] sm:$0xff]  ;;  %v1256_v54 = vcombine.low %v60_v43, %v64_v44 }
  0x3c   :  { %v1265_v57 = vcombine.high %v68_v51, %v72_v52 }
  0x3e   :  { %877 = vmatpush1.bf16.msra.mxu0 %v1324_v60  ;;  %930 = vmatpush1.bf16.msra.mxu1 %v1326_v61  ;;  %v80_v60 = vld [vmem:[%s1889_s1 + $0x1f0] sm:$0xff]  ;;  %v77_v61 = vld [vmem:[%s1889_s1 + $0x1d8] sm:$0xff] }
  0x3f   :  { %878 = vmatprep.subr.bf16.mxu0 %v1333_v62  ;;  %931 = vmatprep.subr.bf16.mxu1 %v1335_v63  ;;  %v81_v62 = vld [vmem:[%s1889_s1 + $0x1f8] sm:$0xff]  ;;  %v1264_v63 = vcombine.low %v68_v51, %v72_v52  ;;  %v1273_v1 = vcombine.high %v76_v59, %v80_v60 }
  0x40   :  { %v1275_v2 = vcombine.high %v77_v61, %v81_v62  ;;  %v1274_v8 = vcombine.low %v77_v61, %v81_v62  ;;  %v140_v62 = vld [vmem:[%s1889_s1 + $0x3d0] sm:$0xff] }
  0x42   :  { %879 = vmatpush1.bf16.msra.mxu0 %v1332_v4  ;;  %932 = vmatpush1.bf16.msra.mxu1 %v1334_v5  ;;  %v88_v4 = vld [vmem:[%s1889_s1 + $0x230] sm:$0xff]  ;;  %v85_v5 = vld [vmem:[%s1889_s1 + $0x218] sm:$0xff] }
  0x43   :  { %954 = vmatprep.subr.bf16.mxu0 %v1217_v6  ;;  %1007 = vmatprep.subr.bf16.mxu1 %v1219_v7  ;;  %v89_v6 = vld [vmem:[%s1889_s1 + $0x238] sm:$0xff]  ;;  %v1272_v7 = vcombine.low %v76_v59, %v80_v60  ;;  %v1281_v9 = vcombine.high %v84_v3, %v88_v4 }
  0x44   :  { %v1283_v11 = vcombine.high %v85_v5, %v89_v6  ;;  %v1282_v17 = vcombine.low %v85_v5, %v89_v6 }
  0x45   :  { %881 = vmatmul.mubr.bf16.vlgmr.msra.gmra.mrb[0].mxu0 %v1618_v10  ;;  %934 = vmatmul.mubr.bf16.vlgmr.msra.gmra.mrb[0].mxu1 %v1618_v10 }
  0x46   :  { %955 = vmatpush1.bf16.msra.mxu0 %v1216_v13  ;;  %1008 = vmatpush1.bf16.msra.mxu1 %v1218_v14  ;;  %v96_v13 = vld [vmem:[%s1889_s1 + $0x270] sm:$0xff]  ;;  %v93_v14 = vld [vmem:[%s1889_s1 + $0x258] sm:$0xff] }
  0x47   :  { %956 = vmatprep.subr.bf16.mxu0 %v1225_v15  ;;  %1009 = vmatprep.subr.bf16.mxu1 %v1227_v16  ;;  %v97_v15 = vld [vmem:[%s1889_s1 + $0x278] sm:$0xff]  ;;  %v1280_v16 = vcombine.low %v84_v3, %v88_v4  ;;  %v1289_v18 = vcombine.high %v92_v12, %v96_v13 }
  0x48   :  { %890 = vmatprep.mubr.bf16.mxu0 %v1635_v19  ;;  %943 = vmatprep.mubr.bf16.mxu1 %v1635_v19  ;;  %v1291_v20 = vcombine.high %v93_v14, %v97_v15  ;;  %v1290_v26 = vcombine.low %v93_v14, %v97_v15 }
  0x4a   :  { %957 = vmatpush1.bf16.msra.mxu0 %v1224_v22  ;;  %1010 = vmatpush1.bf16.msra.mxu1 %v1226_v23  ;;  %v104_v22 = vld [vmem:[%s1889_s1 + $0x2b0] sm:$0xff]  ;;  %v101_v23 = vld [vmem:[%s1889_s1 + $0x298] sm:$0xff] }
  0x4b   :  { %958 = vmatprep.subr.bf16.mxu0 %v1233_v24  ;;  %1011 = vmatprep.subr.bf16.mxu1 %v1235_v25  ;;  %v105_v24 = vld [vmem:[%s1889_s1 + $0x2b8] sm:$0xff]  ;;  %v1288_v25 = vcombine.low %v92_v12, %v96_v13  ;;  %v1297_v27 = vcombine.high %v100_v21, %v104_v22  ;;  %v1824_v12 = vld [vmem:[%s1891_s2] sm:$0xff] }
  0x4c   :  { %v1299_v28 = vcombine.high %v101_v23, %v105_v24  ;;  %v1298_v35 = vcombine.low %v101_v23, %v105_v24 }
  0x4d   :  { %891 = vmatmul.mubr.bf16.gmra.mrb[4].mxu0 %v1662_v30  ;;  %944 = vmatmul.mubr.bf16.gmra.mrb[4].mxu1 %v1662_v30 }
  0x4e   :  { %959 = vmatpush1.bf16.msra.mxu0 %v1232_v31  ;;  %1012 = vmatpush1.bf16.msra.mxu1 %v1234_v32  ;;  %v112_v31 = vld [vmem:[%s1889_s1 + $0x2f0] sm:$0xff]  ;;  %v109_v32 = vld [vmem:[%s1889_s1 + $0x2d8] sm:$0xff] }
  0x4f   :  { %960 = vmatprep.subr.bf16.mxu0 %v1241_v33  ;;  %1013 = vmatprep.subr.bf16.mxu1 %v1243_v34  ;;  %v113_v33 = vld [vmem:[%s1889_s1 + $0x2f8] sm:$0xff]  ;;  %v1296_v34 = vcombine.low %v100_v21, %v104_v22  ;;  %v1305_v36 = vcombine.high %v108_v29, %v112_v31 }
  0x50   :  { %986 = vmatprep.mubr.bf16.mxu0 %v1491_v56  ;;  %1039 = vmatprep.mubr.bf16.mxu1 %v1491_v56  ;;  %v69_v56 = vld [vmem:[%s1889_s1 + $0x198] sm:$0xff]  ;;  %v1307_v37 = vcombine.high %v109_v32, %v113_v33  ;;  %v1306_v43 = vcombine.low %v109_v32, %v113_v33 }
  0x51   :  { %v1267_v58 = vcombine.high %v69_v56, %v73_v53  ;;  %v1266_v0 = vcombine.low %v69_v56, %v73_v53  ;;  %v132_v53 = vld [vmem:[%s1889_s1 + $0x390] sm:$0xff] }
  0x52   :  { %961 = vmatpush1.bf16.msra.mxu0 %v1240_v39  ;;  %1014 = vmatpush1.bf16.msra.mxu1 %v1242_v40  ;;  %v120_v39 = vld [vmem:[%s1889_s1 + $0x330] sm:$0xff]  ;;  %v117_v40 = vld [vmem:[%s1889_s1 + $0x318] sm:$0xff] }
  0x53   :  { %962 = vmatprep.subr.bf16.mxu0 %v1249_v41  ;;  %1015 = vmatprep.subr.bf16.mxu1 %v1251_v42  ;;  %v121_v41 = vld [vmem:[%s1889_s1 + $0x338] sm:$0xff]  ;;  %v1304_v42 = vcombine.low %v108_v29, %v112_v31  ;;  %v1313_v44 = vcombine.high %v116_v38, %v120_v39 }
  0x54   :  { %v1315_v45 = vcombine.high %v117_v40, %v121_v41  ;;  %v1314_v51 = vcombine.low %v117_v40, %v121_v41 }
  0x56   :  { %963 = vmatpush1.bf16.msra.mxu0 %v1248_v47  ;;  %1016 = vmatpush1.bf16.msra.mxu1 %v1250_v48  ;;  %v128_v47 = vld [vmem:[%s1889_s1 + $0x370] sm:$0xff]  ;;  %v125_v48 = vld [vmem:[%s1889_s1 + $0x358] sm:$0xff] }
  0x57   :  { %964 = vmatprep.subr.bf16.mxu0 %v1257_v49  ;;  %1017 = vmatprep.subr.bf16.mxu1 %v1259_v50  ;;  %v129_v49 = vld [vmem:[%s1889_s1 + $0x378] sm:$0xff]  ;;  %v1312_v50 = vcombine.low %v116_v38, %v120_v39  ;;  %v1321_v52 = vcombine.high %v124_v46, %v128_v47 }
  0x58   :  { %v1323_v56 = vcombine.high %v125_v48, %v129_v49  ;;  %v1322_v59 = vcombine.low %v125_v48, %v129_v49 }
  0x5a   :  { %965 = vmatpush1.bf16.msra.mxu0 %v1256_v54  ;;  %1018 = vmatpush1.bf16.msra.mxu1 %v1258_v55  ;;  %v136_v54 = vld [vmem:[%s1889_s1 + $0x3b0] sm:$0xff]  ;;  %v133_v55 = vld [vmem:[%s1889_s1 + $0x398] sm:$0xff] }
  0x5b   :  { %966 = vmatprep.subr.bf16.mxu0 %v1265_v57  ;;  %1019 = vmatprep.subr.bf16.mxu1 %v1267_v58  ;;  %v137_v57 = vld [vmem:[%s1889_s1 + $0x3b8] sm:$0xff]  ;;  %v1320_v58 = vcombine.low %v124_v46, %v128_v47  ;;  %v1329_v60 = vcombine.high %v132_v53, %v136_v54 }
  0x5c   :  { %v1331_v61 = vcombine.high %v133_v55, %v137_v57  ;;  %v1330_v3 = vcombine.low %v133_v55, %v137_v57 }
  0x5e   :  { %967 = vmatpush1.bf16.msra.mxu0 %v1264_v63  ;;  %1020 = vmatpush1.bf16.msra.mxu1 %v1266_v0  ;;  %v144_v63 = vld [vmem:[%s1889_s1 + $0x3f0] sm:$0xff]  ;;  %v141_v0 = vld [vmem:[%s1889_s1 + $0x3d8] sm:$0xff] }
  0x5f   :  { %968 = vmatprep.subr.bf16.mxu0 %v1273_v1  ;;  %1021 = vmatprep.subr.bf16.mxu1 %v1275_v2  ;;  %v145_v1 = vld [vmem:[%s1889_s1 + $0x3f8] sm:$0xff]  ;;  %v1328_v2 = vcombine.low %v132_v53, %v136_v54  ;;  %v1337_v4 = vcombine.high %v140_v62, %v144_v63  ;;  %v1336_v6 = vcombine.low %v140_v62, %v144_v63 }
  0x60   :  { %v1339_v5 = vcombine.high %v141_v0, %v145_v1 }
  0x62   :  { %969 = vmatpush1.bf16.msra.mxu0 %v1272_v7  ;;  %1022 = vmatpush1.bf16.msra.mxu1 %v1274_v8  ;;  %v1338_v7 = vcombine.low %v141_v0, %v145_v1  ;;  %v148_v8 = vlaneseq }
  0x63   :  { %970 = vmatprep.subr.bf16.mxu0 %v1281_v9  ;;  %1023 = vmatprep.subr.bf16.mxu1 %v1283_v11 }
  0x64   :  { %v1818_v9 = vshrl.u32 %v148_v8, 7 }
  0x66   :  { %971 = vmatpush1.bf16.msra.mxu0 %v1280_v16  ;;  %1024 = vmatpush1.bf16.msra.mxu1 %v1282_v17  ;;  %v150_v11 = vsub.s32 0, %v1818_v9  ;;  %v154_v13 = vsub.s32 1, %v1818_v9 }
  0x67   :  { %972 = vmatprep.subr.bf16.mxu0 %v1289_v18  ;;  %1025 = vmatprep.subr.bf16.mxu1 %v1291_v20 }
  0x68   :  { %v151_v14 = vrot.slane %v1824_v12, %v150_v11  ;;  %v155_v15 = vrot.slane %v1824_v12, %v154_v13  ;;  %v166_v13 = vsub.s32 4, %v1818_v9 }
  0x6a   :  { %973 = vmatpush1.bf16.msra.mxu0 %v1288_v25  ;;  %1026 = vmatpush1.bf16.msra.mxu1 %v1290_v26 }
  0x6b   :  { %974 = vmatprep.subr.bf16.mxu0 %v1297_v27  ;;  %1027 = vmatprep.subr.bf16.mxu1 %v1299_v28 }
  0x6e   :  { %975 = vmatpush1.bf16.msra.mxu0 %v1296_v34  ;;  %1028 = vmatpush1.bf16.msra.mxu1 %v1298_v35 }
  0x6f   :  { %976 = vmatprep.subr.bf16.mxu0 %v1305_v36  ;;  %1029 = vmatprep.subr.bf16.mxu1 %v1307_v37 }
  0x72   :  { %977 = vmatpush1.bf16.msra.mxu0 %v1304_v42  ;;  %1030 = vmatpush1.bf16.msra.mxu1 %v1306_v43 }
  0x73   :  { %978 = vmatprep.subr.bf16.mxu0 %v1313_v44  ;;  %1031 = vmatprep.subr.bf16.mxu1 %v1315_v45 }
  0x76   :  { %979 = vmatpush1.bf16.msra.mxu0 %v1312_v50  ;;  %1032 = vmatpush1.bf16.msra.mxu1 %v1314_v51 }
  0x77   :  { %980 = vmatprep.subr.bf16.mxu0 %v1321_v52  ;;  %1033 = vmatprep.subr.bf16.mxu1 %v1323_v56 }
  0x7a   :  { %981 = vmatpush1.bf16.msra.mxu0 %v1320_v58  ;;  %1034 = vmatpush1.bf16.msra.mxu1 %v1322_v59 }
  0x7b   :  { %982 = vmatprep.subr.bf16.mxu0 %v1329_v60  ;;  %1035 = vmatprep.subr.bf16.mxu1 %v1331_v61 }
  0x7e   :  { %983 = vmatpush1.bf16.msra.mxu0 %v1328_v2  ;;  %1036 = vmatpush1.bf16.msra.mxu1 %v1330_v3 }
  0x7f   :  { %984 = vmatprep.subr.bf16.mxu0 %v1337_v4  ;;  %1037 = vmatprep.subr.bf16.mxu1 %v1339_v5 }
  0x82   :  { %985 = vmatpush1.bf16.msra.mxu0 %v1336_v6  ;;  %1038 = vmatpush1.bf16.msra.mxu1 %v1338_v7 }
  0x85   :  { %987 = vmatmul.mubr.bf16.vlgmr.msra.gmra.mrb[8].mxu0 %v1618_v10  ;;  %1040 = vmatmul.mubr.bf16.vlgmr.msra.gmra.mrb[8].mxu1 %v1618_v10  ;;  %v158_v10 = vsub.s32 2, %v1818_v9 }
  0x86   :  { %996 = vmatprep.mubr.bf16.mxu0 %v1635_v19  ;;  %1049 = vmatprep.mubr.bf16.mxu1 %v1635_v19  ;;  %v162_v19 = vsub.s32 3, %v1818_v9 }
  0x88   :  { %v163_v16 = vrot.slane %v1824_v12, %v162_v19  ;;  %v174_v19 = vsub.s32 6, %v1818_v9 }
  0x8d   :  { %997 = vmatmul.mubr.bf16.gmra.mrb[12].mxu0 %v1662_v30  ;;  %1050 = vmatmul.mubr.bf16.gmra.mrb[12].mxu1 %v1662_v30  ;;  %v159_v30 = vrot.slane %v1824_v12, %v158_v10 }
 0x118   :  { %v882_v17 = vpop.f32.mrb[0].mxu0  ;;  %v935_v20 = vpop.f32.mrb[0].mxu1 }
 0x119   :  { %v883_v18 = vadd.f32 %v882_v17, %v151_v14  ;;  %v884_v21 = vpop.f32.mrb[1].mxu0  ;;  %v936_v22 = vadd.f32 %v935_v20, %v159_v30  ;;  %v937_v24 = vpop.f32.mrb[1].mxu1 }
 0x11a   :  { %v885_v23 = vadd.f32 %v884_v21, %v155_v15  ;;  %v886_v25 = vpop.f32.mrb[2].mxu0  ;;  %v938_v27 = vadd.f32 %v937_v24, %v163_v16  ;;  %v939_v29 = vpop.f32.mrb[2].mxu1 }
 0x11b   :  { %v1060_v26 = vmax.f32 %v883_v18, 0.0  ;;  %v887_v28 = vadd.f32 %v886_v25, %v151_v14  ;;  %v888_v31 = vpop.f32.mrb[3].mxu0  ;;  %v1062_v32 = vmax.f32 %v936_v22, 0.0  ;;  %v940_v34 = vadd.f32 %v939_v29, %v159_v30  ;;  %v941_v36 = vpop.f32.mrb[3].mxu1 }
 0x11c   :  { %v1061_v33 = vmax.f32 %v885_v23, 0.0  ;;  %v889_v35 = vadd.f32 %v888_v31, %v155_v15  ;;  %v1063_v37 = vmax.f32 %v938_v27, 0.0  ;;  %v942_v39 = vadd.f32 %v941_v36, %v163_v16 }
 0x11d   :  { %v1068_v38 = vmax.f32 %v887_v28, 0.0  ;;  %v1070_v41 = vmax.f32 %v940_v34, 0.0 }
 0x11e   :  { %v1356_v40 = vpack.c.bf16 %v1061_v33, %v1060_v26  ;;  %v1069_v42 = vmax.f32 %v889_v35, 0.0  ;;  %v1357_v43 = vpack.c.bf16 %v1063_v37, %v1062_v32  ;;  %v1071_v44 = vmax.f32 %v942_v39, 0.0 }
 0x120   :  { %1188 = vst [vmem:[%s1892_s3] sm:$0xff] %v1356_v40  ;;  %v1360_v45 = vpack.c.bf16 %v1069_v42, %v1068_v38  ;;  %v892_v46 = vpop.f32.mrb[4].mxu0  ;;  %1189 = vst [vmem:[%s1892_s3 + $0x8] sm:$0xff] %v1357_v43  ;;  %v1361_v47 = vpack.c.bf16 %v1071_v44, %v1070_v41  ;;  %v945_v49 = vpop.f32.mrb[4].mxu1 }
 0x121   :  { %v893_v48 = vadd.f32 %v892_v46, %v151_v14  ;;  %v894_v50 = vpop.f32.mrb[5].mxu0  ;;  %v946_v51 = vadd.f32 %v945_v49, %v159_v30  ;;  %v947_v56 = vpop.f32.mrb[5].mxu1 }
 0x122   :  { %1192 = vst [vmem:[%s1892_s3 + $0x20] sm:$0xff] %v1360_v45  ;;  %v895_v52 = vadd.f32 %v894_v50, %v155_v15  ;;  %v896_v53 = vpop.f32.mrb[6].mxu0  ;;  %1193 = vst [vmem:[%s1892_s3 + $0x28] sm:$0xff] %v1361_v47  ;;  %v948_v55 = vadd.f32 %v947_v56, %v163_v16  ;;  %v949_v58 = vpop.f32.mrb[6].mxu1 }
 0x123   :  { %v1076_v54 = vmax.f32 %v893_v48, 0.0  ;;  %v897_v57 = vadd.f32 %v896_v53, %v151_v14  ;;  %v898_v59 = vpop.f32.mrb[7].mxu0  ;;  %v1078_v60 = vmax.f32 %v946_v51, 0.0  ;;  %v950_v62 = vadd.f32 %v949_v58, %v159_v30  ;;  %v951_v0 = vpop.f32.mrb[7].mxu1 }
 0x124   :  { %v1077_v61 = vmax.f32 %v895_v52, 0.0  ;;  %v899_v63 = vadd.f32 %v898_v59, %v155_v15  ;;  %v1079_v1 = vmax.f32 %v948_v55, 0.0  ;;  %v952_v3 = vadd.f32 %v951_v0, %v163_v16 }
 0x125   :  { %v1084_v2 = vmax.f32 %v897_v57, 0.0  ;;  %v1086_v5 = vmax.f32 %v950_v62, 0.0  ;;  %v170_v14 = vsub.s32 5, %v1818_v9  ;;  %v178_v30 = vsub.s32 7, %v1818_v9 }
 0x126   :  { %v1364_v4 = vpack.c.bf16 %v1077_v61, %v1076_v54  ;;  %v1085_v6 = vmax.f32 %v899_v63, 0.0  ;;  %v1365_v7 = vpack.c.bf16 %v1079_v1, %v1078_v60  ;;  %v1087_v8 = vmax.f32 %v952_v3, 0.0 }
 0x127   :  { %v167_v15 = vrot.slane %v1824_v12, %v166_v13  ;;  %v175_v16 = vrot.slane %v1824_v12, %v174_v19  ;;  %v171_v17 = vrot.slane %v1824_v12, %v170_v14  ;;  %v179_v18 = vrot.slane %v1824_v12, %v178_v30 }
 0x128   :  { %1196 = vst [vmem:[%s1892_s3 + $0x40] sm:$0xff] %v1364_v4  ;;  %v1368_v11 = vpack.c.bf16 %v1085_v6, %v1084_v2  ;;  %1197 = vst [vmem:[%s1892_s3 + $0x48] sm:$0xff] %v1365_v7  ;;  %v1369_v10 = vpack.c.bf16 %v1087_v8, %v1086_v5 }
 0x12a   :  { %1200 = vst [vmem:[%s1892_s3 + $0x60] sm:$0xff] %v1368_v11  ;;  %1201 = vst [vmem:[%s1892_s3 + $0x68] sm:$0xff] %v1369_v10 }
 0x158   :  { %v988_v20 = vpop.f32.mrb[8].mxu0  ;;  %v1041_v22 = vpop.f32.mrb[8].mxu1 }
 0x159   :  { %v989_v21 = vadd.f32 %v988_v20, %v167_v15  ;;  %v990_v23 = vpop.f32.mrb[9].mxu0  ;;  %v1042_v24 = vadd.f32 %v1041_v22, %v175_v16  ;;  %v1043_v26 = vpop.f32.mrb[9].mxu1 }
 0x15a   :  { %v991_v25 = vadd.f32 %v990_v23, %v171_v17  ;;  %v992_v27 = vpop.f32.mrb[10].mxu0  ;;  %v1044_v29 = vadd.f32 %v1043_v26, %v179_v18  ;;  %v1045_v9 = vpop.f32.mrb[10].mxu1 }
 0x15b   :  { %v1064_v28 = vmax.f32 %v989_v21, 0.0  ;;  %v993_v31 = vadd.f32 %v992_v27, %v167_v15  ;;  %v994_v32 = vpop.f32.mrb[11].mxu0  ;;  %v1066_v33 = vmax.f32 %v1042_v24, 0.0  ;;  %v1046_v35 = vadd.f32 %v1045_v9, %v175_v16  ;;  %v1047_v37 = vpop.f32.mrb[11].mxu1 }
 0x15c   :  { %v1065_v34 = vmax.f32 %v991_v25, 0.0  ;;  %v995_v36 = vadd.f32 %v994_v32, %v171_v17  ;;  %v1067_v38 = vmax.f32 %v1044_v29, 0.0  ;;  %v1048_v39 = vadd.f32 %v1047_v37, %v179_v18 }
 0x15d   :  { %v1072_v12 = vmax.f32 %v993_v31, 0.0  ;;  %v1074_v41 = vmax.f32 %v1046_v35, 0.0 }
 0x15e   :  { %v1358_v40 = vpack.c.bf16 %v1065_v34, %v1064_v28  ;;  %v1073_v42 = vmax.f32 %v995_v36, 0.0  ;;  %v1359_v43 = vpack.c.bf16 %v1067_v38, %v1066_v33  ;;  %v1075_v44 = vmax.f32 %v1048_v39, 0.0 }
 0x160   :  { %1190 = vst [vmem:[%s1892_s3 + $0x10] sm:$0xff] %v1358_v40  ;;  %v1362_v45 = vpack.c.bf16 %v1073_v42, %v1072_v12  ;;  %v998_v46 = vpop.f32.mrb[12].mxu0  ;;  %1191 = vst [vmem:[%s1892_s3 + $0x18] sm:$0xff] %v1359_v43  ;;  %v1363_v47 = vpack.c.bf16 %v1075_v44, %v1074_v41  ;;  %v1051_v49 = vpop.f32.mrb[12].mxu1 }
 0x161   :  { %v999_v48 = vadd.f32 %v998_v46, %v167_v15  ;;  %v1000_v50 = vpop.f32.mrb[13].mxu0  ;;  %v1052_v51 = vadd.f32 %v1051_v49, %v175_v16  ;;  %v1053_v56 = vpop.f32.mrb[13].mxu1 }
 0x162   :  { %1194 = vst [vmem:[%s1892_s3 + $0x30] sm:$0xff] %v1362_v45  ;;  %v1001_v52 = vadd.f32 %v1000_v50, %v171_v17  ;;  %v1002_v53 = vpop.f32.mrb[14].mxu0  ;;  %1195 = vst [vmem:[%s1892_s3 + $0x38] sm:$0xff] %v1363_v47  ;;  %v1054_v55 = vadd.f32 %v1053_v56, %v179_v18  ;;  %v1055_v58 = vpop.f32.mrb[14].mxu1 }
 0x163   :  { %v1080_v54 = vmax.f32 %v999_v48, 0.0  ;;  %v1003_v57 = vadd.f32 %v1002_v53, %v167_v15  ;;  %v1004_v59 = vpop.f32.mrb[15].mxu0  ;;  %v1082_v60 = vmax.f32 %v1052_v51, 0.0  ;;  %v1056_v62 = vadd.f32 %v1055_v58, %v175_v16  ;;  %v1057_v0 = vpop.f32.mrb[15].mxu1 }
 0x164   :  { %v1081_v61 = vmax.f32 %v1001_v52, 0.0  ;;  %v1005_v63 = vadd.f32 %v1004_v59, %v171_v17  ;;  %v1083_v1 = vmax.f32 %v1054_v55, 0.0  ;;  %v1058_v3 = vadd.f32 %v1057_v0, %v179_v18 }
 0x165   :  { %v1088_v2 = vmax.f32 %v1003_v57, 0.0  ;;  %v1090_v5 = vmax.f32 %v1056_v62, 0.0 }
 0x166   :  { %v1366_v4 = vpack.c.bf16 %v1081_v61, %v1080_v54  ;;  %v1089_v6 = vmax.f32 %v1005_v63, 0.0  ;;  %v1367_v7 = vpack.c.bf16 %v1083_v1, %v1082_v60  ;;  %v1091_v8 = vmax.f32 %v1058_v3, 0.0 }
 0x168   :  { %1198 = vst [vmem:[%s1892_s3 + $0x50] sm:$0xff] %v1366_v4  ;;  %v1370_v11 = vpack.c.bf16 %v1089_v6, %v1088_v2  ;;  %1199 = vst [vmem:[%s1892_s3 + $0x58] sm:$0xff] %v1367_v7  ;;  %v1371_v10 = vpack.c.bf16 %v1091_v8, %v1090_v5 }
 0x16a   :  { %1202 = vst [vmem:[%s1892_s3 + $0x70] sm:$0xff] %v1370_v11  ;;  %1203 = vst [vmem:[%s1892_s3 + $0x78] sm:$0xff] %v1371_v10 }

// kernel: atari_a2c_forward.7
= control target key start
LH: loop header
LB: loop body
LE: loop exit
PB: predicated region body
PF: predicated region fallthrough
CT: control target
= control target key end

     0   :  { %vm372_vm0 = vcmask 523264   ;;  %vm546_vm1 = vcmask 519168   ;;  %s909_s1 = inlined_call_operand.vmem [shape: bf16[576,64], index: 1, kind: input, shape index: {}]   ;;  %s910_s0 = inlined_call_operand.vmem [shape: bf16[32,576], index: 0, kind: input, shape index: {}]   ;;  %s911_s2 = inlined_call_operand.vmem [shape: f32[1,64], index: 2, kind: input, shape index: {}]   ;;  %s912_s3 = inlined_call_operand.vmem [shape: bf16[32,64], index: 3, kind: output, shape index: {}]  }
   0x1   :  { %v686_v0 = vld [vmem:[%s909_s1 + $0x40] sm:$0xff]   ;;  %v690_v4 = vld [vmem:[%s909_s1 + $0x48] sm:$0xff]   ;;  %v694_v8 = vld [vmem:[%s909_s1 + $0x50] sm:$0xff]  }
   0x2   :  { %v687_v1 = vld [vmem:[%s909_s1] sm:$0xff]   ;;  %612 = vmatprep.subr.bf16.mxu0 %v686_v0  ;;  %v691_v5 = vld [vmem:[%s909_s1 + $0x8] sm:$0xff]   ;;  %v695_v9 = vld [vmem:[%s909_s1 + $0x10] sm:$0xff]  }
   0x3   :  { %v688_v2 = vld [vmem:[%s909_s1 + $0xc0] sm:$0xff]   ;;  %613 = vmatpush3.bf16.msra.mxu0 %v687_v1  ;;  %v692_v6 = vld [vmem:[%s909_s1 + $0xc8] sm:$0xff]   ;;  %v696_v10 = vld [vmem:[%s909_s1 + $0xd0] sm:$0xff]  }
   0x4   :  { %v689_v3 = vld [vmem:[%s909_s1 + $0x80] sm:$0xff]   ;;  %640 = vmatprep.subr.bf16.mxu1 %v688_v2  ;;  %614 = vmatprep.subr.bf16.mxu0 %v690_v4  ;;  %v693_v7 = vld [vmem:[%s909_s1 + $0x88] sm:$0xff]   ;;  %v697_v11 = vld [vmem:[%s909_s1 + $0x90] sm:$0xff]  }
   0x5   :  { %641 = vmatpush3.bf16.msra.mxu1 %v689_v3  ;;  %v698_v12 = vld [vmem:[%s909_s1 + $0x58] sm:$0xff]   ;;  %v702_v16 = vld [vmem:[%s909_s1 + $0x60] sm:$0xff]   ;;  %v706_v20 = vld [vmem:[%s909_s1 + $0x68] sm:$0xff]  }
   0x6   :  { %642 = vmatprep.subr.bf16.mxu1 %v692_v6  ;;  %v699_v13 = vld [vmem:[%s909_s1 + $0x18] sm:$0xff]   ;;  %v703_v17 = vld [vmem:[%s909_s1 + $0x20] sm:$0xff]   ;;  %v707_v21 = vld [vmem:[%s909_s1 + $0x28] sm:$0xff]  }
   0x7   :  { %615 = vmatpush3.bf16.msra.mxu0 %v691_v5  ;;  %v700_v14 = vld [vmem:[%s909_s1 + $0xd8] sm:$0xff]   ;;  %v704_v18 = vld [vmem:[%s909_s1 + $0xe0] sm:$0xff]   ;;  %v708_v22 = vld [vmem:[%s909_s1 + $0xe8] sm:$0xff]  }
   0x8   :  { %616 = vmatprep.subr.bf16.mxu0 %v694_v8  ;;  %v701_v15 = vld [vmem:[%s909_s1 + $0x98] sm:$0xff]   ;;  %v705_v19 = vld [vmem:[%s909_s1 + $0xa0] sm:$0xff]   ;;  %v709_v23 = vld [vmem:[%s909_s1 + $0xa8] sm:$0xff]  }
   0x9   :  { %643 = vmatpush3.bf16.msra.mxu1 %v693_v7  ;;  %v710_v24 = vld [vmem:[%s909_s1 + $0x70] sm:$0xff]   ;;  %v714_v28 = vld [vmem:[%s909_s1 + $0x78] sm:$0xff]   ;;  %v721_v34 = vld [vmem:[%s909_s1 + $0x100] sm:$0xff]  }
   0xa   :  { %644 = vmatprep.subr.bf16.mxu1 %v696_v10  ;;  %v711_v25 = vld [vmem:[%s909_s1 + $0x30] sm:$0xff]   ;;  %v715_v29 = vld [vmem:[%s909_s1 + $0x38] sm:$0xff]   ;;  %v724_v36 = vld [vmem:[%s910_s0 + $0xc] ss:$20 sps:$4 sm:$0xff]  }
   0xb   :  { %617 = vmatpush3.bf16.msra.mxu0 %v695_v9  ;;  %v712_v26 = vld [vmem:[%s909_s1 + $0xf0] sm:$0xff]   ;;  %v716_v30 = vld [vmem:[%s909_s1 + $0xf8] sm:$0xff]   ;;  %v725_v37 = vld [vmem:[%s909_s1 + $0x108] sm:$0xff]   ;;  %460 = vmatprep.mubr.bf16.mxu1 %v724_v36 }
   0xc   :  { %618 = vmatprep.subr.bf16.mxu0 %v698_v12  ;;  %v713_v27 = vld [vmem:[%s909_s1 + $0xb0] sm:$0xff]   ;;  %v719_v32 = vld [vmem:[%s910_s0 + $0x4] ss:$20 sps:$4 sm:$0xff]   ;;  %v722_v35 = vld [vmem:[%s910_s0 + $0x8] ss:$20 sps:$4 sm:$0xff]  }
   0xd   :  { %645 = vmatpush3.bf16.msra.mxu1 %v697_v11  ;;  %v717_v31 = vld [vmem:[%s910_s0] ss:$20 sps:$4 sm:$0xff]   ;;  %v720_v33 = vld [vmem:[%s909_s1 + $0xb8] sm:$0xff]   ;;  %411 = vmatprep.mubr.bf16.mxu0 %v719_v32  ;;  %v732_v42 = vld [vmem:[%s910_s0 + $0x30] ss:$20 sps:$4 sm:$0xff]  }
   0xe   :  { %646 = vmatprep.subr.bf16.mxu1 %v700_v14  ;;  %v726_v38 = vld [vmem:[%s910_s0 + $0x2c] ss:$20 sps:$4 sm:$0xff]   ;;  %v728_v39 = vld [vmem:[%s910_s0 + $0x28] ss:$20 sps:$4 sm:$0xff]   ;;  %v729_v40 = vld [vmem:[%s909_s1 + $0x110] sm:$0xff]  }
   0xf   :  { %619 = vmatpush3.bf16.msra.mxu0 %v699_v13  ;;  %v730_v41 = vld [vmem:[%s910_s0 + $0x34] ss:$20 sps:$4 sm:$0xff]   ;;  %v733_v43 = vld [vmem:[%s909_s1 + $0x118] sm:$0xff]   ;;  %v734_v44 = vld [vmem:[%s910_s0 + $0x10] ss:$20 sps:$4 sm:$0xff]  }
  0x10   :  { %620 = vmatprep.subr.bf16.mxu0 %v702_v16  ;;  %v735_v45 = vld [vmem:[%s910_s0 + $0x38] ss:$20 sps:$4 sm:$0xff]   ;;  %v555_v47 = vld [vmem:[%s911_s2] ss:$0 sm:$0xff] }
  0x11   :  { %647 = vmatpush3.bf16.msra.mxu1 %v701_v15 }
  0x12   :  { %648 = vmatprep.subr.bf16.mxu1 %v704_v18 }
  0x13   :  { %621 = vmatpush3.bf16.msra.mxu0 %v703_v17 }
  0x14   :  { %622 = vmatprep.subr.bf16.mxu0 %v706_v20 }
  0x15   :  { %649 = vmatpush3.bf16.msra.mxu1 %v705_v19 }
  0x16   :  { %650 = vmatprep.subr.bf16.mxu1 %v708_v22 }
  0x17   :  { %623 = vmatpush3.bf16.msra.mxu0 %v707_v21 }
  0x18   :  { %624 = vmatprep.subr.bf16.mxu0 %v710_v24 }
  0x19   :  { %651 = vmatpush3.bf16.msra.mxu1 %v709_v23 }
  0x1a   :  { %652 = vmatprep.subr.bf16.mxu1 %v712_v26 }
  0x1b   :  { %625 = vmatpush3.bf16.msra.mxu0 %v711_v25 }
  0x1c   :  { %626 = vmatprep.subr.bf16.mxu0 %v714_v28 }
  0x1d   :  { %653 = vmatpush3.bf16.msra.mxu1 %v713_v27 }
  0x1e   :  { %654 = vmatprep.subr.bf16.mxu1 %v716_v30 }
  0x1f   :  { %627 = vmatpush3.bf16.msra.mxu0 %v715_v29 }
  0x20   :  { %674 = vmatprep.subr.bf16.mxu0 %v721_v34 }
  0x21   :  { %655 = vmatpush3.bf16.msra.mxu1 %v720_v33 }
  0x22   :  { %412 = vmatmul.mubr.bf16.vlgmr.msra.gmra.mrb[0].mxu0 %v717_v31 }
  0x23   :  { %675 = vmatpush3.bf16.msra.mxu0 %v721_v34  ;;  %419 = vmatprep.mubr.bf16.mxu0 %v726_v38 }
  0x24   :  { %461 = vmatmul.mubr.bf16.vlgmr.msra.gmra.mrb[0].mxu1 %v722_v35  ;;  %676 = vmatprep.subr.bf16.mxu0 %v725_v37 }
  0x25   :  { %468 = vmatprep.mubr.bf16.mxu1 %v730_v41 }
  0x27   :  { %677 = vmatpush3.bf16.msra.mxu0 %v725_v37 }
  0x28   :  { %678 = vmatprep.subr.bf16.mxu0 %v729_v40 }
  0x2a   :  { %420 = vmatmul.mubr.bf16.gmra.mrb[4].mxu0 %v728_v39 }
  0x2b   :  { %682 = vmatprep.mubr.msk.bf16.mxu0 %vm372_vm0, %v734_v44  ;;  %679 = vmatpush3.bf16.msra.mxu0 %v729_v40 }
  0x2c   :  { %469 = vmatmul.mubr.bf16.gmra.mrb[4].mxu1 %v732_v42  ;;  %680 = vmatprep.subr.bf16.mxu0 %v733_v43 }
  0x2f   :  { %681 = vmatpush3.bf16.msra.mxu0 %v733_v43 }
  0x32   :  { %683 = vmatmul.mubr.msk.bf16.vlgmr.msra.gmra.mrb[8].mxu0 %vm372_vm0, %v735_v45 }
  0xf5   :  { %v628_v46 = vpop.f32.mrb[0].mxu0 }
  0xf6   :  { %v629_v48 = vpop.f32.mrb[1].mxu0 }
  0xf7   :  { %v630_v49 = vadd.f32 %v629_v48, %v628_v46  ;;  %v631_v50 = vpop.f32.mrb[2].mxu0  ;;  %v656_v51 = vpop.f32.mrb[0].mxu1 }
  0xf8   :  { %v632_v52 = vpop.f32.mrb[3].mxu0  ;;  %v657_v55 = vpop.f32.mrb[1].mxu1 }
  0xf9   :  { %v414_v53 = vadd.f32 %v630_v49, %v555_v47  ;;  %v633_v54 = vadd.f32 %v632_v52, %v631_v50  ;;  %v658_v56 = vadd.f32 %v657_v55, %v656_v51  ;;  %v659_v57 = vpop.f32.mrb[2].mxu1 }
  0xfa   :  { %v660_v59 = vpop.f32.mrb[3].mxu1 }
  0xfb   :  { %v417_v58 = vadd.f32 %v633_v54, %v555_v47  ;;  %v661_v60 = vadd.f32 %v660_v59, %v659_v57  ;;  %v463_v61 = vadd.f32 %v658_v56, %v414_v53 }
  0xfd   :  { %v634_v62 = vpop.f32.mrb[4].mxu0  ;;  %v466_v0 = vadd.f32 %v661_v60, %v417_v58 }
  0xfe   :  { %v635_v63 = vpop.f32.mrb[5].mxu0 }
  0xff   :  { %v636_v1 = vadd.f32 %v635_v63, %v634_v62  ;;  %v637_v2 = vpop.f32.mrb[6].mxu0  ;;  %v662_v3 = vpop.f32.mrb[4].mxu1 }
 0x100   :  { %v638_v4 = vpop.f32.mrb[7].mxu0  ;;  %v663_v7 = vpop.f32.mrb[5].mxu1 }
 0x101   :  { %v422_v5 = vadd.f32 %v636_v1, %v555_v47  ;;  %v639_v6 = vadd.f32 %v638_v4, %v637_v2  ;;  %v664_v8 = vadd.f32 %v663_v7, %v662_v3  ;;  %v665_v9 = vpop.f32.mrb[6].mxu1 }
 0x102   :  { %v666_v11 = vpop.f32.mrb[7].mxu1 }
 0x103   :  { %v425_v10 = vadd.f32 %v639_v6, %v555_v47  ;;  %v667_v12 = vadd.f32 %v666_v11, %v665_v9  ;;  %v471_v13 = vadd.f32 %v664_v8, %v422_v5 }
 0x105   :  { %v684_v14 = vpop.f32.mrb[8].mxu0  ;;  %v474_v15 = vadd.f32 %v667_v12, %v425_v10 }
 0x106   :  { %v520_v16 = vadd.f32 %v684_v14, %v471_v13  ;;  %v511_v17 = vpop.f32.mrb[9].mxu0 }
 0x107   :  { %v512_v18 = vadd.f32 %v511_v17, %v463_v61  ;;  %v685_v19 = vpop.f32.mrb[10].mxu0 }
 0x108   :  { %v528_v20 = vmax.f32 %v520_v16, 0.0  ;;  %v523_v21 = vadd.f32 %v685_v19, %v474_v15  ;;  %v514_v22 = vpop.f32.mrb[11].mxu0 }
 0x109   :  { %v526_v23 = vmax.f32 %v512_v18, 0.0  ;;  %v515_v24 = vadd.f32 %v514_v22, %v466_v0 }
 0x10a   :  { %v610_v25 = vpack.c.bf16 %v528_v20, %v528_v20  ;;  %v529_v26 = vmax.f32 %v523_v21, 0.0 }
 0x10b   :  { %v608_v27 = vpack.c.bf16 %v526_v23, %v526_v23  ;;  %v527_v28 = vmax.f32 %v515_v24, 0.0 }
 0x10c   :  { %549 = vst.msk [vmem:[%s912_s3 + $0x8] sm:$0xf] %vm546_vm1, %v610_v25  ;;  %v611_v29 = vpack.c.bf16 %v529_v26, %v529_v26 }
 0x10d   :  { %547 = vst.msk [vmem:[%s912_s3] sm:$0xf] %vm546_vm1, %v608_v27  ;;  %v609_v30 = vpack.c.bf16 %v527_v28, %v527_v28 }
 0x10e   :  { %550 = vst.msk [vmem:[%s912_s3 + $0xc] sm:$0xf] %vm546_vm1, %v611_v29 }
 0x10f   :  { %548 = vst.msk [vmem:[%s912_s3 + $0x4] sm:$0xf] %vm546_vm1, %v609_v30 }

// kernel: atari_a2c_forward.9
= control target key start
LH: loop header
LB: loop body
LE: loop exit
PB: predicated region body
PF: predicated region fallthrough
CT: control target
= control target key end

     0   :  { %vm826_vm0 = vcmask 56320   ;;  %s1371_s1 = inlined_call_operand.vmem [shape: bf16[1024,7], index: 1, kind: input, shape index: {}]   ;;  %s1372_s0 = inlined_call_operand.vmem [shape: bf16[32,1024], index: 0, kind: input, shape index: {}]   ;;  %s1373_s2 = inlined_call_operand.vmem [shape: f32[1,7], index: 2, kind: input, shape index: {}]   ;;  %s1374_s3 = inlined_call_operand.vmem [shape: f32[32,7], index: 3, kind: output, shape index: {}]  }
   0x1   :  { %v1028_v0 = vld [vmem:[%s1371_s1 + $0x40] sm:$0xff]   ;;  %v1032_v4 = vld [vmem:[%s1371_s1 + $0x48] sm:$0xff]   ;;  %v1036_v8 = vld [vmem:[%s1371_s1 + $0x50] sm:$0xff]  }
   0x2   :  { %v1029_v1 = vld [vmem:[%s1371_s1 + $0xc0] sm:$0xff]   ;;  %916 = vmatprep.subr.bf16.mxu0 %v1028_v0  ;;  %v1033_v5 = vld [vmem:[%s1371_s1 + $0xc8] sm:$0xff]   ;;  %v1037_v9 = vld [vmem:[%s1371_s1 + $0xd0] sm:$0xff]  }
   0x3   :  { %v1030_v2 = vld [vmem:[%s1371_s1] sm:$0xff]   ;;  %944 = vmatprep.subr.bf16.mxu1 %v1029_v1  ;;  %v1034_v6 = vld [vmem:[%s1371_s1 + $0x8] sm:$0xff]   ;;  %v1038_v10 = vld [vmem:[%s1371_s1 + $0x10] sm:$0xff]  }
   0x4   :  { %v1031_v3 = vld [vmem:[%s1371_s1 + $0x80] sm:$0xff]   ;;  %917 = vmatpush3.bf16.msra.mxu0 %v1030_v2  ;;  %v1035_v7 = vld [vmem:[%s1371_s1 + $0x88] sm:$0xff]   ;;  %v1039_v11 = vld [vmem:[%s1371_s1 + $0x90] sm:$0xff]  }
   0x5   :  { %945 = vmatpush3.bf16.msra.mxu1 %v1031_v3  ;;  %918 = vmatprep.subr.bf16.mxu0 %v1032_v4  ;;  %v1040_v12 = vld [vmem:[%s1371_s1 + $0x58] sm:$0xff]   ;;  %v1044_v16 = vld [vmem:[%s1371_s1 + $0x60] sm:$0xff]   ;;  %v1048_v20 = vld [vmem:[%s1371_s1 + $0x68] sm:$0xff]  }
   0x6   :  { %946 = vmatprep.subr.bf16.mxu1 %v1033_v5  ;;  %v1041_v13 = vld [vmem:[%s1371_s1 + $0xd8] sm:$0xff]   ;;  %v1045_v17 = vld [vmem:[%s1371_s1 + $0xe0] sm:$0xff]   ;;  %v1049_v21 = vld [vmem:[%s1371_s1 + $0xe8] sm:$0xff]  }
   0x7   :  { %v1042_v14 = vld [vmem:[%s1371_s1 + $0x18] sm:$0xff]   ;;  %v1046_v18 = vld [vmem:[%s1371_s1 + $0x20] sm:$0xff]   ;;  %v1050_v22 = vld [vmem:[%s1371_s1 + $0x28] sm:$0xff]  }
   0x8   :  { %919 = vmatpush3.bf16.msra.mxu0 %v1034_v6  ;;  %v1043_v15 = vld [vmem:[%s1371_s1 + $0x98] sm:$0xff]   ;;  %v1047_v19 = vld [vmem:[%s1371_s1 + $0xa0] sm:$0xff]   ;;  %v1051_v23 = vld [vmem:[%s1371_s1 + $0xa8] sm:$0xff]  }
   0x9   :  { %947 = vmatpush3.bf16.msra.mxu1 %v1035_v7  ;;  %920 = vmatprep.subr.bf16.mxu0 %v1036_v8  ;;  %v1052_v24 = vld [vmem:[%s1371_s1 + $0x70] sm:$0xff]   ;;  %v1056_v28 = vld [vmem:[%s1371_s1 + $0x78] sm:$0xff]   ;;  %v15_v32 = vld [vmem:[%s1372_s0] sm:$0xff] }
   0xa   :  { %948 = vmatprep.subr.bf16.mxu1 %v1037_v9  ;;  %v1053_v25 = vld [vmem:[%s1371_s1 + $0xf0] sm:$0xff]   ;;  %v1057_v29 = vld [vmem:[%s1371_s1 + $0xf8] sm:$0xff]   ;;  %v19_v33 = vld [vmem:[%s1372_s0 + $0x20] sm:$0xff] }
   0xb   :  { %v1054_v26 = vld [vmem:[%s1371_s1 + $0x30] sm:$0xff]   ;;  %v1058_v30 = vld [vmem:[%s1371_s1 + $0x38] sm:$0xff]   ;;  %v16_v34 = vld [vmem:[%s1372_s0 + $0x8] sm:$0xff]  ;;  %v836_v35 = vcombine.low %v15_v32, %v19_v33  ;;  %v837_v36 = vcombine.high %v15_v32, %v19_v33 }
   0xc   :  { %921 = vmatpush3.bf16.msra.mxu0 %v1038_v10  ;;  %v1055_v27 = vld [vmem:[%s1371_s1 + $0xb0] sm:$0xff]   ;;  %v1059_v31 = vld [vmem:[%s1371_s1 + $0xb8] sm:$0xff]   ;;  %v20_v37 = vld [vmem:[%s1372_s0 + $0x28] sm:$0xff] }
   0xd   :  { %949 = vmatpush3.bf16.msra.mxu1 %v1039_v11  ;;  %922 = vmatprep.subr.bf16.mxu0 %v1040_v12  ;;  %v838_v38 = vcombine.low %v16_v34, %v20_v37  ;;  %v839_v39 = vcombine.high %v16_v34, %v20_v37  ;;  %v1060_v40 = vld [vmem:[%s1371_s1 + $0x140] sm:$0xff]   ;;  %v1064_v44 = vld [vmem:[%s1371_s1 + $0x148] sm:$0xff]   ;;  %v1068_v48 = vld [vmem:[%s1371_s1 + $0x150] sm:$0xff]  }
   0xe   :  { %950 = vmatprep.subr.bf16.mxu1 %v1041_v13  ;;  %662 = vmatprep.mubr.bf16.mxu0 %v837_v36  ;;  %v1061_v41 = vld [vmem:[%s1371_s1 + $0x1c0] sm:$0xff]   ;;  %v1065_v45 = vld [vmem:[%s1371_s1 + $0x1c8] sm:$0xff]   ;;  %v1069_v49 = vld [vmem:[%s1371_s1 + $0x1d0] sm:$0xff]  }
   0xf   :  { %711 = vmatprep.mubr.bf16.mxu1 %v839_v39  ;;  %v1062_v42 = vld [vmem:[%s1371_s1 + $0x100] sm:$0xff]   ;;  %v1066_v46 = vld [vmem:[%s1371_s1 + $0x108] sm:$0xff]   ;;  %v1070_v50 = vld [vmem:[%s1371_s1 + $0x110] sm:$0xff]  }
  0x10   :  { %923 = vmatpush3.bf16.msra.mxu0 %v1042_v14  ;;  %v1063_v43 = vld [vmem:[%s1371_s1 + $0x180] sm:$0xff]   ;;  %v1067_v47 = vld [vmem:[%s1371_s1 + $0x188] sm:$0xff]   ;;  %v1071_v51 = vld [vmem:[%s1371_s1 + $0x190] sm:$0xff]  }
  0x11   :  { %951 = vmatpush3.bf16.msra.mxu1 %v1043_v15  ;;  %924 = vmatprep.subr.bf16.mxu0 %v1044_v16  ;;  %v1072_v52 = vld [vmem:[%s1371_s1 + $0x158] sm:$0xff]   ;;  %v1076_v56 = vld [vmem:[%s1371_s1 + $0x160] sm:$0xff]   ;;  %v1080_v63 = vld [vmem:[%s1371_s1 + $0x168] sm:$0xff]  }
  0x12   :  { %952 = vmatprep.subr.bf16.mxu1 %v1045_v17  ;;  %v1073_v53 = vld [vmem:[%s1371_s1 + $0x1d8] sm:$0xff]   ;;  %v1077_v57 = vld [vmem:[%s1371_s1 + $0x1e0] sm:$0xff]   ;;  %v1081_v1 = vld [vmem:[%s1371_s1 + $0x1e8] sm:$0xff]  }
  0x13   :  { %v1074_v54 = vld [vmem:[%s1371_s1 + $0x118] sm:$0xff]   ;;  %v1078_v58 = vld [vmem:[%s1371_s1 + $0x120] sm:$0xff]   ;;  %v1082_v2 = vld [vmem:[%s1371_s1 + $0x128] sm:$0xff]  }
  0x14   :  { %925 = vmatpush3.bf16.msra.mxu0 %v1046_v18  ;;  %v1075_v55 = vld [vmem:[%s1371_s1 + $0x198] sm:$0xff]   ;;  %v1079_v59 = vld [vmem:[%s1371_s1 + $0x1a0] sm:$0xff]   ;;  %v1083_v3 = vld [vmem:[%s1371_s1 + $0x1a8] sm:$0xff]  }
  0x15   :  { %953 = vmatpush3.bf16.msra.mxu1 %v1047_v19  ;;  %926 = vmatprep.subr.bf16.mxu0 %v1048_v20  ;;  %v23_v60 = vld [vmem:[%s1372_s0 + $0x40] sm:$0xff]  ;;  %v24_v4 = vld [vmem:[%s1372_s0 + $0x48] sm:$0xff]  ;;  %v1084_v8 = vld [vmem:[%s1371_s1 + $0x170] sm:$0xff]  }
  0x16   :  { %954 = vmatprep.subr.bf16.mxu1 %v1049_v21  ;;  %v27_v61 = vld [vmem:[%s1372_s0 + $0x60] sm:$0xff]  ;;  %v28_v5 = vld [vmem:[%s1372_s0 + $0x68] sm:$0xff]  ;;  %v1085_v9 = vld [vmem:[%s1371_s1 + $0x1f0] sm:$0xff]  }
  0x17   :  { %v845_v62 = vcombine.high %v23_v60, %v27_v61  ;;  %v844_v0 = vcombine.low %v23_v60, %v27_v61  ;;  %v847_v6 = vcombine.high %v24_v4, %v28_v5  ;;  %v846_v7 = vcombine.low %v24_v4, %v28_v5  ;;  %v1086_v10 = vld [vmem:[%s1371_s1 + $0x130] sm:$0xff]   ;;  %v1088_v12 = vld [vmem:[%s1371_s1 + $0x178] sm:$0xff]   ;;  %v835_v34 = vld [vmem:[%s1373_s2] ss:$0 sm:$0xff] }
  0x18   :  { %927 = vmatpush3.bf16.msra.mxu0 %v1050_v22  ;;  %v1087_v11 = vld [vmem:[%s1371_s1 + $0x1b0] sm:$0xff]   ;;  %v1089_v13 = vld [vmem:[%s1371_s1 + $0x1f8] sm:$0xff]  }
  0x19   :  { %955 = vmatpush3.bf16.msra.mxu1 %v1051_v23  ;;  %928 = vmatprep.subr.bf16.mxu0 %v1052_v24  ;;  %v1090_v14 = vld [vmem:[%s1371_s1 + $0x138] sm:$0xff]   ;;  %v17_v16 = vld [vmem:[%s1372_s0 + $0x10] sm:$0xff] }
  0x1a   :  { %956 = vmatprep.subr.bf16.mxu1 %v1053_v25  ;;  %v1091_v15 = vld [vmem:[%s1371_s1 + $0x1b8] sm:$0xff]   ;;  %v21_v17 = vld [vmem:[%s1372_s0 + $0x30] sm:$0xff] }
  0x1b   :  { %v18_v18 = vld [vmem:[%s1372_s0 + $0x18] sm:$0xff]  ;;  %v840_v20 = vcombine.low %v17_v16, %v21_v17  ;;  %v841_v21 = vcombine.high %v17_v16, %v21_v17  ;;  %v25_v24 = vld [vmem:[%s1372_s0 + $0x50] sm:$0xff] }
  0x1c   :  { %929 = vmatpush3.bf16.msra.mxu0 %v1054_v26  ;;  %v22_v19 = vld [vmem:[%s1372_s0 + $0x38] sm:$0xff]  ;;  %v29_v25 = vld [vmem:[%s1372_s0 + $0x70] sm:$0xff] }
  0x1d   :  { %957 = vmatpush3.bf16.msra.mxu1 %v1055_v27  ;;  %930 = vmatprep.subr.bf16.mxu0 %v1056_v28  ;;  %v842_v22 = vcombine.low %v18_v18, %v22_v19  ;;  %v843_v23 = vcombine.high %v18_v18, %v22_v19  ;;  %v26_v26 = vld [vmem:[%s1372_s0 + $0x58] sm:$0xff]  ;;  %v849_v27 = vcombine.high %v25_v24, %v29_v25 }
  0x1e   :  { %958 = vmatprep.subr.bf16.mxu1 %v1057_v29  ;;  %v30_v28 = vld [vmem:[%s1372_s0 + $0x78] sm:$0xff] }
  0x1f   :  { %v851_v29 = vcombine.high %v26_v26, %v30_v28 }
  0x20   :  { %931 = vmatpush3.bf16.msra.mxu0 %v1058_v30  ;;  %v848_v30 = vcombine.low %v25_v24, %v29_v25 }
  0x21   :  { %959 = vmatpush3.bf16.msra.mxu1 %v1059_v31  ;;  %972 = vmatprep.subr.bf16.mxu0 %v1060_v40  ;;  %v850_v31 = vcombine.low %v26_v26, %v30_v28 }
  0x22   :  { %1000 = vmatprep.subr.bf16.mxu1 %v1061_v41 }
  0x23   :  { %663 = vmatmul.mubr.bf16.vlgmr.msra.gmra.mrb[0].mxu0 %v836_v35 }
  0x24   :  { %712 = vmatmul.mubr.bf16.vlgmr.msra.gmra.mrb[0].mxu1 %v838_v38  ;;  %973 = vmatpush3.bf16.msra.mxu0 %v1062_v42 }
  0x25   :  { %1001 = vmatpush3.bf16.msra.mxu1 %v1063_v43  ;;  %974 = vmatprep.subr.bf16.mxu0 %v1064_v44 }
  0x26   :  { %1002 = vmatprep.subr.bf16.mxu1 %v1065_v45  ;;  %670 = vmatprep.mubr.bf16.mxu0 %v845_v62 }
  0x27   :  { %719 = vmatprep.mubr.bf16.mxu1 %v847_v6 }
  0x28   :  { %975 = vmatpush3.bf16.msra.mxu0 %v1066_v46 }
  0x29   :  { %1003 = vmatpush3.bf16.msra.mxu1 %v1067_v47  ;;  %976 = vmatprep.subr.bf16.mxu0 %v1068_v48 }
  0x2a   :  { %1004 = vmatprep.subr.bf16.mxu1 %v1069_v49 }
  0x2b   :  { %671 = vmatmul.mubr.bf16.gmra.mrb[4].mxu0 %v844_v0 }
  0x2c   :  { %977 = vmatpush3.bf16.msra.mxu0 %v1070_v50  ;;  %720 = vmatmul.mubr.bf16.gmra.mrb[4].mxu1 %v846_v7 }
  0x2d   :  { %1005 = vmatpush3.bf16.msra.mxu1 %v1071_v51  ;;  %978 = vmatprep.subr.bf16.mxu0 %v1072_v52 }
  0x2e   :  { %1006 = vmatprep.subr.bf16.mxu1 %v1073_v53  ;;  %760 = vmatprep.mubr.bf16.mxu0 %v841_v21 }
  0x2f   :  { %809 = vmatprep.mubr.bf16.mxu1 %v843_v23 }
  0x30   :  { %979 = vmatpush3.bf16.msra.mxu0 %v1074_v54 }
  0x31   :  { %1007 = vmatpush3.bf16.msra.mxu1 %v1075_v55  ;;  %980 = vmatprep.subr.bf16.mxu0 %v1076_v56 }
  0x32   :  { %1008 = vmatprep.subr.bf16.mxu1 %v1077_v57 }
  0x34   :  { %981 = vmatpush3.bf16.msra.mxu0 %v1078_v58 }
  0x35   :  { %1009 = vmatpush3.bf16.msra.mxu1 %v1079_v59  ;;  %982 = vmatprep.subr.bf16.mxu0 %v1080_v63 }
  0x36   :  { %1010 = vmatprep.subr.bf16.mxu1 %v1081_v1 }
  0x38   :  { %983 = vmatpush3.bf16.msra.mxu0 %v1082_v2 }
  0x39   :  { %1011 = vmatpush3.bf16.msra.mxu1 %v1083_v3  ;;  %984 = vmatprep.subr.bf16.mxu0 %v1084_v8 }
  0x3a   :  { %1012 = vmatprep.subr.bf16.mxu1 %v1085_v9 }
  0x3c   :  { %985 = vmatpush3.bf16.msra.mxu0 %v1086_v10 }
  0x3d   :  { %1013 = vmatpush3.bf16.msra.mxu1 %v1087_v11  ;;  %986 = vmatprep.subr.bf16.mxu0 %v1088_v12 }
  0x3e   :  { %1014 = vmatprep.subr.bf16.mxu1 %v1089_v13 }
  0x40   :  { %987 = vmatpush3.bf16.msra.mxu0 %v1090_v14 }
  0x41   :  { %1015 = vmatpush3.bf16.msra.mxu1 %v1091_v15 }
  0x43   :  { %761 = vmatmul.mubr.bf16.vlgmr.msra.gmra.mrb[8].mxu0 %v840_v20 }
  0x44   :  { %810 = vmatmul.mubr.bf16.vlgmr.msra.gmra.mrb[8].mxu1 %v842_v22  ;;  %768 = vmatprep.mubr.bf16.mxu0 %v849_v27 }
  0x45   :  { %817 = vmatprep.mubr.bf16.mxu1 %v851_v29 }
  0x4b   :  { %769 = vmatmul.mubr.bf16.gmra.mrb[12].mxu0 %v848_v30 }
  0x4c   :  { %818 = vmatmul.mubr.bf16.gmra.mrb[12].mxu1 %v850_v31 }
  0xf6   :  { %v932_v32 = vpop.f32.mrb[0].mxu0 }
  0xf7   :  { %v960_v33 = vpop.f32.mrb[0].mxu1  ;;  %v933_v35 = vpop.f32.mrb[1].mxu0 }
  0xf8   :  { %v934_v36 = vadd.f32 %v933_v35, %v932_v32  ;;  %v961_v37 = vpop.f32.mrb[1].mxu1  ;;  %v935_v38 = vpop.f32.mrb[2].mxu0 }
  0xf9   :  { %v962_v39 = vadd.f32 %v961_v37, %v960_v33  ;;  %v963_v40 = vpop.f32.mrb[2].mxu1  ;;  %v936_v41 = vpop.f32.mrb[3].mxu0 }
  0xfa   :  { %v665_v42 = vadd.f32 %v934_v36, %v835_v34  ;;  %v937_v43 = vadd.f32 %v936_v41, %v935_v38  ;;  %v964_v44 = vpop.f32.mrb[3].mxu1 }
  0xfb   :  { %v965_v45 = vadd.f32 %v964_v44, %v963_v40 }
  0xfc   :  { %v714_v46 = vadd.f32 %v962_v39, %v665_v42  ;;  %v668_v47 = vadd.f32 %v937_v43, %v835_v34 }
  0xfe   :  { %v717_v48 = vadd.f32 %v965_v45, %v668_v47  ;;  %v938_v49 = vpop.f32.mrb[4].mxu0 }
  0xff   :  { %v939_v50 = vpop.f32.mrb[5].mxu0  ;;  %v966_v56 = vpop.f32.mrb[4].mxu1 }
 0x100   :  { %v940_v51 = vadd.f32 %v939_v50, %v938_v49  ;;  %v941_v52 = vpop.f32.mrb[6].mxu0  ;;  %v967_v57 = vpop.f32.mrb[5].mxu1 }
 0x101   :  { %v942_v53 = vpop.f32.mrb[7].mxu0  ;;  %v968_v59 = vadd.f32 %v967_v57, %v966_v56  ;;  %v969_v60 = vpop.f32.mrb[6].mxu1 }
 0x102   :  { %v943_v54 = vadd.f32 %v942_v53, %v941_v52  ;;  %v673_v55 = vadd.f32 %v940_v51, %v835_v34  ;;  %v970_v61 = vpop.f32.mrb[7].mxu1 }
 0x103   :  { %v971_v63 = vadd.f32 %v970_v61, %v969_v60 }
 0x104   :  { %v676_v58 = vadd.f32 %v943_v54, %v835_v34  ;;  %v722_v62 = vadd.f32 %v968_v59, %v673_v55 }
 0x106   :  { %v725_v0 = vadd.f32 %v971_v63, %v676_v58 }
 0x116   :  { %v988_v1 = vpop.f32.mrb[8].mxu0 }
 0x117   :  { %v1016_v2 = vpop.f32.mrb[8].mxu1  ;;  %v989_v3 = vpop.f32.mrb[9].mxu0 }
 0x118   :  { %v1017_v4 = vpop.f32.mrb[9].mxu1  ;;  %v990_v5 = vadd.f32 %v989_v3, %v988_v1  ;;  %v991_v7 = vpop.f32.mrb[10].mxu0 }
 0x119   :  { %v1018_v6 = vadd.f32 %v1017_v4, %v1016_v2  ;;  %v1019_v8 = vpop.f32.mrb[10].mxu1  ;;  %v992_v9 = vpop.f32.mrb[11].mxu0 }
 0x11a   :  { %v1020_v10 = vpop.f32.mrb[11].mxu1  ;;  %v763_v11 = vadd.f32 %v990_v5, %v714_v46  ;;  %v993_v12 = vadd.f32 %v992_v9, %v991_v7 }
 0x11b   :  { %v1021_v13 = vadd.f32 %v1020_v10, %v1019_v8 }
 0x11c   :  { %v812_v14 = vadd.f32 %v1018_v6, %v763_v11  ;;  %v766_v15 = vadd.f32 %v993_v12, %v717_v48 }
 0x11e   :  { %827 = vst.msk [vmem:[%s1374_s3] sm:$0xff] %vm826_vm0, %v812_v14  ;;  %v815_v16 = vadd.f32 %v1021_v13, %v766_v15  ;;  %v994_v17 = vpop.f32.mrb[12].mxu0 }
 0x11f   :  { %v1022_v18 = vpop.f32.mrb[12].mxu1  ;;  %v995_v19 = vpop.f32.mrb[13].mxu0 }
 0x120   :  { %v1023_v20 = vpop.f32.mrb[13].mxu1  ;;  %828 = vst.msk [vmem:[%s1374_s3 + $0x8] sm:$0xff] %vm826_vm0, %v815_v16  ;;  %v996_v21 = vadd.f32 %v995_v19, %v994_v17  ;;  %v997_v23 = vpop.f32.mrb[14].mxu0 }
 0x121   :  { %v1024_v22 = vadd.f32 %v1023_v20, %v1022_v18  ;;  %v1025_v24 = vpop.f32.mrb[14].mxu1  ;;  %v998_v25 = vpop.f32.mrb[15].mxu0 }
 0x122   :  { %v1026_v26 = vpop.f32.mrb[15].mxu1  ;;  %v771_v27 = vadd.f32 %v996_v21, %v722_v62  ;;  %v999_v28 = vadd.f32 %v998_v25, %v997_v23 }
 0x123   :  { %v1027_v29 = vadd.f32 %v1026_v26, %v1025_v24 }
 0x124   :  { %v820_v30 = vadd.f32 %v1024_v22, %v771_v27  ;;  %v774_v31 = vadd.f32 %v999_v28, %v725_v0 }
 0x126   :  { %829 = vst.msk [vmem:[%s1374_s3 + $0x10] sm:$0xff] %vm826_vm0, %v820_v30  ;;  %v823_v32 = vadd.f32 %v1027_v29, %v774_v31 }
 0x128   :  { %830 = vst.msk [vmem:[%s1374_s3 + $0x18] sm:$0xff] %vm826_vm0, %v823_v32 }

</bundles_post_ra>
